<compile_context>
chip_gen: v7x
topology: tpu7x:2x2x1
jax: 0.10.0
libtpu: 0.0.40
codegen_flags: <defaults>
</compile_context>

<pallas_src>
import functools

import jax
import jax.numpy as jnp
from jax import lax
from jax.experimental import pallas as pl
from jax.experimental.pallas import tpu as pltpu

EPS = 1e-5  # nn.GroupNorm default


def _block_kernel(x_ref, w_ref, b_ref, g_ref, beta_ref, m_ref, o_ref, *,
                  K, Wp, groups, cpg, H, W, batch_tile):
    # x_ref: (bt, Cin, L)  flattened reflection-padded input (+K-1 overhang)
    # w_ref: (K*K, Cout, Cin)   one (Cout, Cin) matrix per conv tap
    # b/g/beta: (Cout, 1) f32   m_ref: (1, H*Wp) f32 {0,1} valid-column mask
    # o_ref: (bt, Cout, H*Wp)
    HWp = H * Wp
    cout = o_ref.shape[1]
    bias = b_ref[...]
    if groups > 0:
        gamma = g_ref[...]
        beta = beta_ref[...]
        mask = m_ref[...].reshape(1, 1, HWp)
        inv_n = 1.0 / float(cpg * H * W)      # count only the W valid columns

    def body(bb, carry):
        # Conv as K*K shifted-slice matmuls; f32 accumulation on the MXU.
        acc = jnp.zeros((cout, HWp), jnp.float32)
        for ki in range(K):                    # static taps
            for kj in range(K):
                wk = w_ref[ki * K + kj]                           # (Cout, Cin)
                band = x_ref[bb, :, pl.ds(ki * Wp + kj, HWp)]     # (Cin, HWp)
                acc = acc + jnp.dot(wk, band,
                                    preferred_element_type=jnp.float32)
        y = acc + bias                                            # (Cout, HWp)

        if groups > 0:
            # GroupNorm: masked, centered two-pass stats over the valid columns.
            yg = y.reshape(groups, cpg, HWp)
            mean = jnp.sum(jnp.sum(yg * mask, axis=2, keepdims=True),
                           axis=1, keepdims=True) * inv_n         # (g,1,1)
            yc = yg - mean
            var = jnp.sum(jnp.sum(yc * yc * mask, axis=2, keepdims=True),
                          axis=1, keepdims=True) * inv_n
            inv = lax.rsqrt(var + EPS)
            yn = (yc * inv).reshape(cout, HWp) * gamma + beta
        else:                                   # groups == 0 module variant
            yn = y

        # Mish with a single exp: tanh(softplus(x)) = (t^2+2t)/(t^2+2t+2).
        t = jnp.exp(jnp.minimum(yn, 20.0))
        u = t * (t + 2.0)
        mish = yn * (u * pl.reciprocal(u + 2.0, approx=True))
        # torch softplus threshold: for x > 20, tanh(softplus(x)) == 1 in f32.
        o_ref[bb] = jnp.where(yn > 20.0, yn, mish).astype(o_ref.dtype)
        return carry

    lax.fori_loop(0, batch_tile, body, 0, unroll=True)


def block_forward(x, conv_w, conv_b, gn_gamma=None, gn_beta=None, *, groups=8,
                  kernel_size=3, batch_tile=None,
                  compute_dtype=jnp.bfloat16, out_dtype=jnp.float32):
    """x: (B, Cin, H, W) NCHW.  Returns (B, Cout, H, W)."""
    B, Cin, H, W = x.shape
    Cout = conv_w.shape[0]
    K = kernel_size
    pad = (K - 1) // 2
    Hp, Wp = H + 2 * pad, W + 2 * pad
    HWp = H * Wp
    L = Hp * Wp + (K - 1)            # flat padded spatial + overhang for last shift
    cpg = Cout // groups if groups else 0

    # --- wrapper glue (plain JAX): reflection pad, flatten, small tables -----
    xp = jnp.pad(x, ((0, 0), (0, 0), (pad, pad), (pad, pad)), mode="reflect")
    xflat = jnp.pad(xp.reshape(B, Cin, Hp * Wp), ((0, 0), (0, 0), (0, K - 1)))
    xflat = xflat.astype(compute_dtype)
    # (Cout, Cin, K, K) -> (K*K, Cout, Cin): one (Cout, Cin) matrix per tap.
    w3d = jnp.transpose(conv_w, (2, 3, 0, 1)).reshape(K * K, Cout, Cin)
    w3d = w3d.astype(compute_dtype)
    b2d = conv_b.reshape(Cout, 1).astype(jnp.float32)
    if gn_gamma is None:
        gn_gamma = jnp.ones((Cout,), jnp.float32)    # nn.GroupNorm default init
    if gn_beta is None:
        gn_beta = jnp.zeros((Cout,), jnp.float32)
    g2d = gn_gamma.reshape(Cout, 1).astype(jnp.float32)
    beta2d = gn_beta.reshape(Cout, 1).astype(jnp.float32)
    # {0,1} mask: of every Wp-run only the first W columns are real output.
    mask2d = jnp.tile((jnp.arange(Wp) < W).astype(jnp.float32), (H,))
    mask2d = mask2d.reshape(1, HWp)

    # --- VMEM-aware batch_tile (divisor of B, capped at B//2 => grid >= 2) ---
    in_b = Cin * L * jnp.dtype(compute_dtype).itemsize
    out_b = Cout * HWp * jnp.dtype(out_dtype).itemsize
    fixed = 2 * (K * K * Cout * Cin * jnp.dtype(compute_dtype).itemsize
                 + 3 * Cout * 4 + HWp * 4)
    budget = 40 << 20                      # safe under v7x's 64 MiB physical VMEM
    if batch_tile is None:
        batch_tile = 1
        cap = max(1, B // 2)
        for cand in range(1, cap + 1):
            if B % cand == 0 and 2 * cand * (in_b + out_b) + fixed <= budget:
                batch_tile = cand
    assert B % batch_tile == 0
    need = 2 * batch_tile * (in_b + out_b) + fixed
    vmem_limit = int(min(max(need + (8 << 20), 16 << 20), 48 << 20))

    kernel = functools.partial(_block_kernel, K=K, Wp=Wp, groups=groups,
                               cpg=cpg, H=H, W=W, batch_tile=batch_tile)

    out = pl.pallas_call(
        kernel,
        out_shape=jax.ShapeDtypeStruct((B, Cout, HWp), out_dtype),
        grid_spec=pltpu.PrefetchScalarGridSpec(
            num_scalar_prefetch=0,
            grid=(B // batch_tile,),
            in_specs=[
                pl.BlockSpec((batch_tile, Cin, L), lambda i: (i, 0, 0)),
                pl.BlockSpec((K * K, Cout, Cin), lambda i: (0, 0, 0)),
                pl.BlockSpec((Cout, 1), lambda i: (0, 0)),
                pl.BlockSpec((Cout, 1), lambda i: (0, 0)),
                pl.BlockSpec((Cout, 1), lambda i: (0, 0)),
                pl.BlockSpec((1, HWp), lambda i: (0, 0)),
            ],
            out_specs=pl.BlockSpec((batch_tile, Cout, HWp),
                                   lambda i: (i, 0, 0)),
        ),
        compiler_params=pltpu.CompilerParams(
            dimension_semantics=("parallel",),
            vmem_limit_bytes=vmem_limit),
    )(xflat, w3d, b2d, g2d, beta2d, mask2d)

    # (B, Cout, H*Wp) -> drop the Wp-W overhang columns -> NCHW.
    return out.reshape(B, Cout, H, Wp)[:, :, :, :W]


def _reference(x, conv_w, conv_b, gn_gamma, gn_beta, *, groups, kernel_size=3):
    """Pure-JAX reference matching the PyTorch module."""
    B, Cin, H, W = x.shape
    Cout = conv_w.shape[0]
    pad = (kernel_size - 1) // 2
    xp = jnp.pad(x, ((0, 0), (0, 0), (pad, pad), (pad, pad)), mode="reflect")
    y = lax.conv_general_dilated(
        xp, conv_w, window_strides=(1, 1), padding="VALID",
        dimension_numbers=("NCHW", "OIHW", "NCHW"))
    y = y + conv_b.reshape(1, Cout, 1, 1)
    if groups:
        cpg = Cout // groups
        yg = y.reshape(B, groups, cpg, H, W)
        mean = yg.mean(axis=(2, 3, 4), keepdims=True)
        var = ((yg - mean) ** 2).mean(axis=(2, 3, 4), keepdims=True)
        yn = ((yg - mean) / jnp.sqrt(var + EPS)).reshape(B, Cout, H, W)
        yn = yn * gn_gamma.reshape(1, Cout, 1, 1) + gn_beta.reshape(1, Cout, 1, 1)
    else:
        yn = y
    sp = jnp.where(yn > 20.0, yn, jnp.log1p(jnp.exp(jnp.minimum(yn, 20.0))))
    return yn * jnp.tanh(sp)


if __name__ == "__main__":
    # Block(dim=4, dim_out=16, kernel_size=3, groups=8)
    B, Cin, H, W = 2, 4, 16, 16
    Cout, K, groups = 16, 3, 8

    key = jax.random.PRNGKey(0)
    kx, kw, kb, kg, kbeta = jax.random.split(key, 5)
    x = jax.random.normal(kx, (B, Cin, H, W), dtype=jnp.float32)
    conv_w = 0.1 * jax.random.normal(kw, (Cout, Cin, K, K), dtype=jnp.float32)
    conv_b = 0.1 * jax.random.normal(kb, (Cout,), dtype=jnp.float32)
    gn_gamma = 1.0 + 0.1 * jax.random.normal(kg, (Cout,), dtype=jnp.float32)
    gn_beta = 0.1 * jax.random.normal(kbeta, (Cout,), dtype=jnp.float32)

    ref = _reference(x, conv_w, conv_b, gn_gamma, gn_beta,
                     groups=groups, kernel_size=K)

    # Default path: bf16 conv inputs/weights, f32 accumulate / GroupNorm / Mish.
    out = block_forward(x, conv_w, conv_b, gn_gamma, gn_beta,
                        groups=groups, kernel_size=K)
    out = jax.block_until_ready(out)
    assert out.shape == (B, Cout, H, W)
    # Tolerance covers bf16-rounded conv inputs + approx EUP reciprocal.
    assert jnp.allclose(out, ref, atol=3e-2, rtol=3e-2), "bf16 path mismatch"

    # f32 conv-input path: same tolerance as the previously validated version.
    out32 = jax.block_until_ready(
        block_forward(x, conv_w, conv_b, gn_gamma, gn_beta, groups=groups,
                      kernel_size=K, compute_dtype=jnp.float32))
    assert jnp.allclose(out32, ref, atol=1e-2, rtol=1e-2), "f32 path mismatch"

    # groups=0 variant of the module (pad -> conv -> Mish, no GroupNorm).
    ref0 = _reference(x, conv_w, conv_b, gn_gamma, gn_beta,
                      groups=0, kernel_size=K)
    out0 = jax.block_until_ready(
        block_forward(x, conv_w, conv_b, groups=0, kernel_size=K,
                      compute_dtype=jnp.float32))
    assert jnp.allclose(out0, ref0, atol=1e-2, rtol=1e-2), "groups=0 mismatch"

    print("KERNEL_OK")
</pallas_src>

<mosaic_0001>
module attributes {stable_mosaic.version = 11 : i64} {
  func.func @_block_kernel(%arg0: i32, %arg1: memref<1x4x326xbf16, #tpu.memory_space<vmem>>, %arg2: memref<9x16x4xbf16, #tpu.memory_space<vmem>>, %arg3: memref<16x1xf32, #tpu.memory_space<vmem>>, %arg4: memref<16x1xf32, #tpu.memory_space<vmem>>, %arg5: memref<16x1xf32, #tpu.memory_space<vmem>>, %arg6: memref<1x288xf32, #tpu.memory_space<vmem>>, %arg7: memref<1x16x288xf32, #tpu.memory_space<vmem>>) attributes {dimension_semantics = [#tpu.dimension_semantics<parallel>], iteration_bounds = array<i64: 2>, scalar_prefetch = 0 : i64, scratch_operands = 0 : i64, tpu.core_type = #tpu.core_type<tc>, window_params = [{transform_indices = @transform_0, window_bounds = array<i64: 1, 4, 326>}, {pipeline_mode = #tpu.pipeline_mode<synchronous>, transform_indices = @transform_1, window_bounds = array<i64: 9, 16, 4>}, {pipeline_mode = #tpu.pipeline_mode<synchronous>, transform_indices = @transform_2, window_bounds = array<i64: 16, 1>}, {pipeline_mode = #tpu.pipeline_mode<synchronous>, transform_indices = @transform_3, window_bounds = array<i64: 16, 1>}, {pipeline_mode = #tpu.pipeline_mode<synchronous>, transform_indices = @transform_4, window_bounds = array<i64: 16, 1>}, {pipeline_mode = #tpu.pipeline_mode<synchronous>, transform_indices = @transform_5, window_bounds = array<i64: 1, 288>}, {transform_indices = @transform_6, window_bounds = array<i64: 1, 16, 288>}]} {
    %c0 = arith.constant 0 : index
    %c0_0 = arith.constant 0 : index
    %0 = vector.load %arg3[%c0, %c0_0] : memref<16x1xf32, #tpu.memory_space<vmem>>, vector<16x1xf32>
    %c0_1 = arith.constant 0 : index
    %c0_2 = arith.constant 0 : index
    %1 = vector.load %arg4[%c0_1, %c0_2] : memref<16x1xf32, #tpu.memory_space<vmem>>, vector<16x1xf32>
    %c0_3 = arith.constant 0 : index
    %c0_4 = arith.constant 0 : index
    %2 = vector.load %arg5[%c0_3, %c0_4] : memref<16x1xf32, #tpu.memory_space<vmem>>, vector<16x1xf32>
    %c0_5 = arith.constant 0 : index
    %c0_6 = arith.constant 0 : index
    %3 = vector.load %arg6[%c0_5, %c0_6] : memref<1x288xf32, #tpu.memory_space<vmem>>, vector<1x288xf32>
    %4 = vector.shape_cast %3 : vector<1x288xf32> to vector<1x1x288xf32>
    %c0_i32 = arith.constant 0 : i32
    %cst = arith.constant 0.000000e+00 : f32
    %5 = vector.broadcast %cst : f32 to vector<16x288xf32>
    %c0_7 = arith.constant 0 : index
    %c0_8 = arith.constant 0 : index
    %c0_9 = arith.constant 0 : index
    %6 = vector.load %arg2[%c0_7, %c0_8, %c0_9] : memref<9x16x4xbf16, #tpu.memory_space<vmem>>, vector<1x16x4xbf16>
    %7 = vector.shape_cast %6 : vector<1x16x4xbf16> to vector<16x4xbf16>
    %8 = arith.index_cast %c0_i32 : i32 to index
    %c0_10 = arith.constant 0 : index
    %c0_11 = arith.constant 0 : index
    %9 = vector.load %arg1[%8, %c0_10, %c0_11] : memref<1x4x326xbf16, #tpu.memory_space<vmem>>, vector<1x4x288xbf16>
    %10 = vector.shape_cast %9 : vector<1x4x288xbf16> to vector<4x288xbf16>
    %cst_12 = arith.constant dense<0.000000e+00> : vector<16x288xf32>
    %11 = tpu.matmul %7, %10, %cst_12 {dimension_numbers = #tpu.dot_dimension_numbers<[1], [0], [0], [1], [0, 0, 1, 1], [], []>} : vector<16x4xbf16>, vector<4x288xbf16>, vector<16x288xf32> -> vector<16x288xf32>
    %12 = arith.addf %5, %11 : vector<16x288xf32>
    %c1 = arith.constant 1 : index
    %c0_13 = arith.constant 0 : index
    %c0_14 = arith.constant 0 : index
    %13 = vector.load %arg2[%c1, %c0_13, %c0_14] : memref<9x16x4xbf16, #tpu.memory_space<vmem>>, vector<1x16x4xbf16>
    %14 = vector.shape_cast %13 : vector<1x16x4xbf16> to vector<16x4xbf16>
    %15 = arith.index_cast %c0_i32 : i32 to index
    %c0_15 = arith.constant 0 : index
    %c1_16 = arith.constant 1 : index
    %16 = vector.load %arg1[%15, %c0_15, %c1_16] : memref<1x4x326xbf16, #tpu.memory_space<vmem>>, vector<1x4x288xbf16>
    %17 = vector.shape_cast %16 : vector<1x4x288xbf16> to vector<4x288xbf16>
    %cst_17 = arith.constant dense<0.000000e+00> : vector<16x288xf32>
    %18 = tpu.matmul %14, %17, %cst_17 {dimension_numbers = #tpu.dot_dimension_numbers<[1], [0], [0], [1], [0, 0, 1, 1], [], []>} : vector<16x4xbf16>, vector<4x288xbf16>, vector<16x288xf32> -> vector<16x288xf32>
    %19 = arith.addf %12, %18 : vector<16x288xf32>
    %c2 = arith.constant 2 : index
    %c0_18 = arith.constant 0 : index
    %c0_19 = arith.constant 0 : index
    %20 = vector.load %arg2[%c2, %c0_18, %c0_19] : memref<9x16x4xbf16, #tpu.memory_space<vmem>>, vector<1x16x4xbf16>
    %21 = vector.shape_cast %20 : vector<1x16x4xbf16> to vector<16x4xbf16>
    %22 = arith.index_cast %c0_i32 : i32 to index
    %c0_20 = arith.constant 0 : index
    %c2_21 = arith.constant 2 : index
    %23 = vector.load %arg1[%22, %c0_20, %c2_21] : memref<1x4x326xbf16, #tpu.memory_space<vmem>>, vector<1x4x288xbf16>
    %24 = vector.shape_cast %23 : vector<1x4x288xbf16> to vector<4x288xbf16>
    %cst_22 = arith.constant dense<0.000000e+00> : vector<16x288xf32>
    %25 = tpu.matmul %21, %24, %cst_22 {dimension_numbers = #tpu.dot_dimension_numbers<[1], [0], [0], [1], [0, 0, 1, 1], [], []>} : vector<16x4xbf16>, vector<4x288xbf16>, vector<16x288xf32> -> vector<16x288xf32>
    %26 = arith.addf %19, %25 : vector<16x288xf32>
    %c3 = arith.constant 3 : index
    %c0_23 = arith.constant 0 : index
    %c0_24 = arith.constant 0 : index
    %27 = vector.load %arg2[%c3, %c0_23, %c0_24] : memref<9x16x4xbf16, #tpu.memory_space<vmem>>, vector<1x16x4xbf16>
    %28 = vector.shape_cast %27 : vector<1x16x4xbf16> to vector<16x4xbf16>
    %29 = arith.index_cast %c0_i32 : i32 to index
    %c0_25 = arith.constant 0 : index
    %c18 = arith.constant 18 : index
    %30 = vector.load %arg1[%29, %c0_25, %c18] : memref<1x4x326xbf16, #tpu.memory_space<vmem>>, vector<1x4x288xbf16>
    %31 = vector.shape_cast %30 : vector<1x4x288xbf16> to vector<4x288xbf16>
    %cst_26 = arith.constant dense<0.000000e+00> : vector<16x288xf32>
    %32 = tpu.matmul %28, %31, %cst_26 {dimension_numbers = #tpu.dot_dimension_numbers<[1], [0], [0], [1], [0, 0, 1, 1], [], []>} : vector<16x4xbf16>, vector<4x288xbf16>, vector<16x288xf32> -> vector<16x288xf32>
    %33 = arith.addf %26, %32 : vector<16x288xf32>
    %c4 = arith.constant 4 : index
    %c0_27 = arith.constant 0 : index
    %c0_28 = arith.constant 0 : index
    %34 = vector.load %arg2[%c4, %c0_27, %c0_28] : memref<9x16x4xbf16, #tpu.memory_space<vmem>>, vector<1x16x4xbf16>
    %35 = vector.shape_cast %34 : vector<1x16x4xbf16> to vector<16x4xbf16>
    %36 = arith.index_cast %c0_i32 : i32 to index
    %c0_29 = arith.constant 0 : index
    %c19 = arith.constant 19 : index
    %37 = vector.load %arg1[%36, %c0_29, %c19] : memref<1x4x326xbf16, #tpu.memory_space<vmem>>, vector<1x4x288xbf16>
    %38 = vector.shape_cast %37 : vector<1x4x288xbf16> to vector<4x288xbf16>
    %cst_30 = arith.constant dense<0.000000e+00> : vector<16x288xf32>
    %39 = tpu.matmul %35, %38, %cst_30 {dimension_numbers = #tpu.dot_dimension_numbers<[1], [0], [0], [1], [0, 0, 1, 1], [], []>} : vector<16x4xbf16>, vector<4x288xbf16>, vector<16x288xf32> -> vector<16x288xf32>
    %40 = arith.addf %33, %39 : vector<16x288xf32>
    %c5 = arith.constant 5 : index
    %c0_31 = arith.constant 0 : index
    %c0_32 = arith.constant 0 : index
    %41 = vector.load %arg2[%c5, %c0_31, %c0_32] : memref<9x16x4xbf16, #tpu.memory_space<vmem>>, vector<1x16x4xbf16>
    %42 = vector.shape_cast %41 : vector<1x16x4xbf16> to vector<16x4xbf16>
    %43 = arith.index_cast %c0_i32 : i32 to index
    %c0_33 = arith.constant 0 : index
    %c20 = arith.constant 20 : index
    %44 = vector.load %arg1[%43, %c0_33, %c20] : memref<1x4x326xbf16, #tpu.memory_space<vmem>>, vector<1x4x288xbf16>
    %45 = vector.shape_cast %44 : vector<1x4x288xbf16> to vector<4x288xbf16>
    %cst_34 = arith.constant dense<0.000000e+00> : vector<16x288xf32>
    %46 = tpu.matmul %42, %45, %cst_34 {dimension_numbers = #tpu.dot_dimension_numbers<[1], [0], [0], [1], [0, 0, 1, 1], [], []>} : vector<16x4xbf16>, vector<4x288xbf16>, vector<16x288xf32> -> vector<16x288xf32>
    %47 = arith.addf %40, %46 : vector<16x288xf32>
    %c6 = arith.constant 6 : index
    %c0_35 = arith.constant 0 : index
    %c0_36 = arith.constant 0 : index
    %48 = vector.load %arg2[%c6, %c0_35, %c0_36] : memref<9x16x4xbf16, #tpu.memory_space<vmem>>, vector<1x16x4xbf16>
    %49 = vector.shape_cast %48 : vector<1x16x4xbf16> to vector<16x4xbf16>
    %50 = arith.index_cast %c0_i32 : i32 to index
    %c0_37 = arith.constant 0 : index
    %c36 = arith.constant 36 : index
    %51 = vector.load %arg1[%50, %c0_37, %c36] : memref<1x4x326xbf16, #tpu.memory_space<vmem>>, vector<1x4x288xbf16>
    %52 = vector.shape_cast %51 : vector<1x4x288xbf16> to vector<4x288xbf16>
    %cst_38 = arith.constant dense<0.000000e+00> : vector<16x288xf32>
    %53 = tpu.matmul %49, %52, %cst_38 {dimension_numbers = #tpu.dot_dimension_numbers<[1], [0], [0], [1], [0, 0, 1, 1], [], []>} : vector<16x4xbf16>, vector<4x288xbf16>, vector<16x288xf32> -> vector<16x288xf32>
    %54 = arith.addf %47, %53 : vector<16x288xf32>
    %c7 = arith.constant 7 : index
    %c0_39 = arith.constant 0 : index
    %c0_40 = arith.constant 0 : index
    %55 = vector.load %arg2[%c7, %c0_39, %c0_40] : memref<9x16x4xbf16, #tpu.memory_space<vmem>>, vector<1x16x4xbf16>
    %56 = vector.shape_cast %55 : vector<1x16x4xbf16> to vector<16x4xbf16>
    %57 = arith.index_cast %c0_i32 : i32 to index
    %c0_41 = arith.constant 0 : index
    %c37 = arith.constant 37 : index
    %58 = vector.load %arg1[%57, %c0_41, %c37] : memref<1x4x326xbf16, #tpu.memory_space<vmem>>, vector<1x4x288xbf16>
    %59 = vector.shape_cast %58 : vector<1x4x288xbf16> to vector<4x288xbf16>
    %cst_42 = arith.constant dense<0.000000e+00> : vector<16x288xf32>
    %60 = tpu.matmul %56, %59, %cst_42 {dimension_numbers = #tpu.dot_dimension_numbers<[1], [0], [0], [1], [0, 0, 1, 1], [], []>} : vector<16x4xbf16>, vector<4x288xbf16>, vector<16x288xf32> -> vector<16x288xf32>
    %61 = arith.addf %54, %60 : vector<16x288xf32>
    %c8 = arith.constant 8 : index
    %c0_43 = arith.constant 0 : index
    %c0_44 = arith.constant 0 : index
    %62 = vector.load %arg2[%c8, %c0_43, %c0_44] : memref<9x16x4xbf16, #tpu.memory_space<vmem>>, vector<1x16x4xbf16>
    %63 = vector.shape_cast %62 : vector<1x16x4xbf16> to vector<16x4xbf16>
    %64 = arith.index_cast %c0_i32 : i32 to index
    %c0_45 = arith.constant 0 : index
    %c38 = arith.constant 38 : index
    %65 = vector.load %arg1[%64, %c0_45, %c38] : memref<1x4x326xbf16, #tpu.memory_space<vmem>>, vector<1x4x288xbf16>
    %66 = vector.shape_cast %65 : vector<1x4x288xbf16> to vector<4x288xbf16>
    %cst_46 = arith.constant dense<0.000000e+00> : vector<16x288xf32>
    %67 = tpu.matmul %63, %66, %cst_46 {dimension_numbers = #tpu.dot_dimension_numbers<[1], [0], [0], [1], [0, 0, 1, 1], [], []>} : vector<16x4xbf16>, vector<4x288xbf16>, vector<16x288xf32> -> vector<16x288xf32>
    %68 = arith.addf %61, %67 : vector<16x288xf32>
    %69 = vector.broadcast %0 : vector<16x1xf32> to vector<16x288xf32>
    %70 = arith.addf %68, %69 : vector<16x288xf32>
    %71 = vector.shape_cast %70 : vector<16x288xf32> to vector<8x2x288xf32>
    %72 = vector.broadcast %4 : vector<1x1x288xf32> to vector<8x2x288xf32>
    %73 = arith.mulf %71, %72 : vector<8x2x288xf32>
    %cst_47 = arith.constant dense<0.000000e+00> : vector<8x2xf32>
    %74 = vector.multi_reduction <add>, %73, %cst_47 [2] : vector<8x2x288xf32> to vector<8x2xf32>
    %75 = vector.shape_cast %74 : vector<8x2xf32> to vector<8x2x1xf32>
    %cst_48 = arith.constant dense<0.000000e+00> : vector<8x1xf32>
    %76 = vector.multi_reduction <add>, %75, %cst_48 [1] : vector<8x2x1xf32> to vector<8x1xf32>
    %77 = vector.shape_cast %76 : vector<8x1xf32> to vector<8x1x1xf32>
    %cst_49 = arith.constant 0.001953125 : f32
    %78 = vector.broadcast %cst_49 : f32 to vector<8x1x1xf32>
    %79 = arith.mulf %77, %78 : vector<8x1x1xf32>
    %80 = vector.broadcast %79 : vector<8x1x1xf32> to vector<8x2x288xf32>
    %81 = arith.subf %71, %80 : vector<8x2x288xf32>
    %82 = arith.mulf %81, %81 : vector<8x2x288xf32>
    %83 = vector.broadcast %4 : vector<1x1x288xf32> to vector<8x2x288xf32>
    %84 = arith.mulf %82, %83 : vector<8x2x288xf32>
    %cst_50 = arith.constant dense<0.000000e+00> : vector<8x2xf32>
    %85 = vector.multi_reduction <add>, %84, %cst_50 [2] : vector<8x2x288xf32> to vector<8x2xf32>
    %86 = vector.shape_cast %85 : vector<8x2xf32> to vector<8x2x1xf32>
    %cst_51 = arith.constant dense<0.000000e+00> : vector<8x1xf32>
    %87 = vector.multi_reduction <add>, %86, %cst_51 [1] : vector<8x2x1xf32> to vector<8x1xf32>
    %88 = vector.shape_cast %87 : vector<8x1xf32> to vector<8x1x1xf32>
    %cst_52 = arith.constant 0.001953125 : f32
    %89 = vector.broadcast %cst_52 : f32 to vector<8x1x1xf32>
    %90 = arith.mulf %88, %89 : vector<8x1x1xf32>
    %cst_53 = arith.constant 9.99999974E-6 : f32
    %91 = vector.broadcast %cst_53 : f32 to vector<8x1x1xf32>
    %92 = arith.addf %90, %91 : vector<8x1x1xf32>
    %93 = math.rsqrt %92 : vector<8x1x1xf32>
    %94 = vector.broadcast %93 : vector<8x1x1xf32> to vector<8x2x288xf32>
    %95 = arith.mulf %81, %94 : vector<8x2x288xf32>
    %96 = vector.shape_cast %95 : vector<8x2x288xf32> to vector<16x288xf32>
    %97 = vector.broadcast %1 : vector<16x1xf32> to vector<16x288xf32>
    %98 = arith.mulf %96, %97 : vector<16x288xf32>
    %99 = vector.broadcast %2 : vector<16x1xf32> to vector<16x288xf32>
    %100 = arith.addf %98, %99 : vector<16x288xf32>
    %cst_54 = arith.constant 2.000000e+01 : f32
    %101 = vector.broadcast %cst_54 : f32 to vector<16x288xf32>
    %102 = arith.minimumf %100, %101 : vector<16x288xf32>
    %103 = math.exp %102 : vector<16x288xf32>
    %cst_55 = arith.constant 2.000000e+00 : f32
    %104 = vector.broadcast %cst_55 : f32 to vector<16x288xf32>
    %105 = arith.addf %103, %104 : vector<16x288xf32>
    %106 = arith.mulf %103, %105 : vector<16x288xf32>
    %cst_56 = arith.constant 2.000000e+00 : f32
    %107 = vector.broadcast %cst_56 : f32 to vector<16x288xf32>
    %108 = arith.addf %106, %107 : vector<16x288xf32>
    %109 = tpu.reciprocal %108 {approx = true} : vector<16x288xf32> -> vector<16x288xf32>
    %110 = arith.mulf %106, %109 : vector<16x288xf32>
    %111 = arith.mulf %100, %110 : vector<16x288xf32>
    %cst_57 = arith.constant 2.000000e+01 : f32
    %112 = vector.broadcast %cst_57 : f32 to vector<16x288xf32>
    %113 = arith.cmpf ogt, %100, %112 : vector<16x288xf32>
    %114 = arith.select %113, %100, %111 : vector<16x288xi1>, vector<16x288xf32>
    %115 = arith.index_cast %c0_i32 : i32 to index
    %c0_58 = arith.constant 0 : index
    %c0_59 = arith.constant 0 : index
    %116 = vector.load %arg7[%115, %c0_58, %c0_59] : memref<1x16x288xf32, #tpu.memory_space<vmem>>, vector<1x16x288xf32>
    %117 = vector.shape_cast %116 : vector<1x16x288xf32> to vector<16x288xf32>
    %118 = vector.shape_cast %114 : vector<16x288xf32> to vector<1x16x288xf32>
    tpu.vector_store %arg7[%115, %c0_58, %c0_59], %118 {strides = array<i32>} : memref<1x16x288xf32, #tpu.memory_space<vmem>>, vector<1x16x288xf32>,
    %c1_i32 = arith.constant 1 : i32
    return
  }
  func.func @transform_0(%arg0: i32) -> (i32, i32, i32) {
    %c0_i32 = arith.constant 0 : i32
    %c0_i32_0 = arith.constant 0 : i32
    %c0_i32_1 = arith.constant 0 : i32
    return %arg0, %c0_i32, %c0_i32_0 : i32, i32, i32
  }
  func.func @transform_1(%arg0: i32) -> (i32, i32, i32) {
    %c0_i32 = arith.constant 0 : i32
    %c0_i32_0 = arith.constant 0 : i32
    %c0_i32_1 = arith.constant 0 : i32
    %c0_i32_2 = arith.constant 0 : i32
    return %c0_i32, %c0_i32_0, %c0_i32_1 : i32, i32, i32
  }
  func.func @transform_2(%arg0: i32) -> (i32, i32) {
    %c0_i32 = arith.constant 0 : i32
    %c0_i32_0 = arith.constant 0 : i32
    %c0_i32_1 = arith.constant 0 : i32
    return %c0_i32, %c0_i32_0 : i32, i32
  }
  func.func @transform_3(%arg0: i32) -> (i32, i32) {
    %c0_i32 = arith.constant 0 : i32
    %c0_i32_0 = arith.constant 0 : i32
    %c0_i32_1 = arith.constant 0 : i32
    return %c0_i32, %c0_i32_0 : i32, i32
  }
  func.func @transform_4(%arg0: i32) -> (i32, i32) {
    %c0_i32 = arith.constant 0 : i32
    %c0_i32_0 = arith.constant 0 : i32
    %c0_i32_1 = arith.constant 0 : i32
    return %c0_i32, %c0_i32_0 : i32, i32
  }
  func.func @transform_5(%arg0: i32) -> (i32, i32) {
    %c0_i32 = arith.constant 0 : i32
    %c0_i32_0 = arith.constant 0 : i32
    %c0_i32_1 = arith.constant 0 : i32
    return %c0_i32, %c0_i32_0 : i32, i32
  }
  func.func @transform_6(%arg0: i32) -> (i32, i32, i32) {
    %c0_i32 = arith.constant 0 : i32
    %c0_i32_0 = arith.constant 0 : i32
    %c0_i32_1 = arith.constant 0 : i32
    return %arg0, %c0_i32, %c0_i32_0 : i32, i32, i32
  }
}

</mosaic_0001>

<bundles_post_ra>
// kernel: tpu_custom_call.1
= control target key start
LH: loop header
LB: loop body
LE: loop exit
PB: predicated region body
PF: predicated region fallthrough
CT: control target
= control target key end

     0   :  { %11 = vsyncpa [#allocation3], 0  ;;  %s3599_s0 = inlined_call_operand.vmem [shape: bf16[2,4,326], index: 0, kind: input, shape index: {}]   ;;  %s3600_s1 = inlined_call_operand.vmem [shape: bf16[9,16,4], index: 1, kind: input, shape index: {}]   ;;  %s3601_s2 = inlined_call_operand.vmem [shape: f32[16,1], index: 2, kind: input, shape index: {}]   ;;  %s3602_s3 = inlined_call_operand.vmem [shape: f32[16,1], index: 3, kind: input, shape index: {}]   ;;  %s3603_s4 = inlined_call_operand.vmem [shape: f32[16,1], index: 4, kind: input, shape index: {}]   ;;  %s3604_s5 = inlined_call_operand.vmem [shape: f32[1,288], index: 5, kind: input, shape index: {}]   ;;  %s3605_s6 = inlined_call_operand.hbm [shape: f32[2,16,288], index: 6, kind: output, shape index: {}]  }
   0x1   :  { %13 = vsyncpa [#allocation3 + $0x1], 0  ;;  %s3024_s21 = smov 0   ;;  %s3026_s22 = smov 0  }
   0x2   :  { %s3028_s23 = smov 0   ;;  %s3030_s24 = smov 0  }
   0x3 LB: > { %s3045_s25 = sadd.s32 4294967295, %s2968_s24   ;;  %s2615_s26 = sadd.s32 4294967294, %s2968_s24   ;;  %s2968_s24 = sphi %s3030_s24, %s3611_s24   ;;  %s2964_s23 = sphi %s3028_s23, %s3610_s23   ;;  %s2960_s22 = sphi %s3026_s22, %s3609_s22   ;;  %s2956_s21 = sphi %s3024_s21, %s3608_s21  }
   0x4   : > { %s3049_s27 = sadd.s32 1, %s2968_s24   ;;  %s157_s28 = sadd.s32 1, %s2964_s23 }
   0x5   : > { %s154_s29 = ssub.s32 %s2968_s24, %s3049_s27  ;;  %p167_p0 = scmp.ne.s32.totalorder %s2964_s23, %s2960_s22 }
   0x6   : > { %p155_p1 = scmp.eq.s32.totalorder %s154_s29, 0  ;;  %p168_p2 = scmp.eq.s32.totalorder %s3045_s25, 1 }
   0x7   : > { %p173_p3 = scmp.ne.s32.totalorder %s2960_s22, %s2956_s21  ;;  %p174_p4 = scmp.eq.s32.totalorder %s2615_s26, 1 }
   0x8   : > { %s3060_s30 = scalar_select %p155_p1, %s2964_s23, %s157_s28  }
   0x9   : > { %p3062_p5 = por %p168_p2, %p167_p0  ;;  %p3066_p6 = por %p174_p4, %p173_p3 }
   0xa   : > { %p2618_p7 = scmp.ge.s32.totalorder %s2968_s24, 1  ;;  %p215_p8 = scmp.lt.s32.totalorder %s2968_s24, 3 }
   0xc   : > { %p216_p9 = pnand %p2618_p7, %p215_p8 }
   0xd   : > { %p245_p10 = scmp.lt.s32.totalorder (!%p216_p9), %s3045_s25, 1  ;;  %v274_v0 = vlaneseq (!%p216_p9)  ;;  %v2970_v1 = vmov (!%p216_p9), 1983009808   ;;  %v2971_v3 = vmov (!%p216_p9), 0.0   ;;  %vm2972_vm0 = vmmov (!%p216_p9), 0   ;;  %s2974_s14 = smov (!%p216_p9), 127  }
   0xe   : > { %219 = sbr.rel (%p216_p9) target bundleno = 910 (0x38e), region = 44  ;;  %v272_v2 = vunpack.c.l.s4 (!%p216_p9), %v2970_v1  ;;  %2693 = vmatprep.subr.bf16.mxu1 (!%p216_p9), %v2971_v3  ;;  %2695 = vmatprep.mubr.msk.bf16.mxu1 (!%p216_p9), %vm2972_vm0, %v2971_v3  ;;  %v2973_v6 = vmov (!%p216_p9), 0   ;;  %s2975_s15 = smov (!%p216_p9), 126   ;;  %v251_v48 = vld [vmem:[%s3601_s2] sm:$0xff] (!%p216_p9)  ;;  %v252_v49 = vld [vmem:[%s3601_s2 + $0x8] sm:$0xff] (!%p216_p9)  ;;  %vm299_vm1 = vcmask (!%p216_p9), 1041408  }
   0xf   : > { %v3075_v4 = vshrl.u32 (!%p216_p9), %v274_v0, 7  ;;  %341 = vmatprep.mubr.bf16.mxu0 (!%p216_p9), %v2973_v6  ;;  %2839 = vset.pattern.permute.xlu0 (!%p216_p9), %v2973_v6  ;;  %s2976_s16 = smov (!%p216_p9), 110   ;;  %s2977_s17 = smov (!%p216_p9), 109   ;;  %vm292_vm2 = vcmask (!%p216_p9), 1039360   ;;  %v2849_v53 = vld [vmem:[%s3600_s1 + $0x8] sm:$0xff] (!%p216_p9)   ;;  %vm295_vm3 = vcmask (!%p216_p9), 31744  }
  0x10   : > { %v273_v5 = vunpack.c.0.s8 (!%p216_p9), %v272_v2  ;;  %2840 = vset.pattern.permute.xlu1 (!%p216_p9), %v2973_v6  ;;  %s2978_s18 = smov (!%p216_p9), 108   ;;  %s2979_s19 = smov (!%p216_p9), 92   ;;  %vm526_vm4 = vcmask (!%p216_p9), 1031168   ;;  %v2850_v63 = vld [vmem:[%s3600_s1] sm:$0xff] (!%p216_p9)   ;;  %vm663_vm5 = vcmask (!%p216_p9), 900096   ;;  %vm800_vm6 = vcmask (!%p216_p9), 891904  }
  0x11   : > { %s2980_s20 = smov (!%p216_p9), 91   ;;  %s2981_s26 = smov (!%p216_p9), 90   ;;  %vm937_vm7 = vcmask (!%p216_p9), 883712   ;;  %vm1074_vm8 = vcmask (!%p216_p9), 752640   ;;  %vm1211_vm9 = vcmask (!%p216_p9), 744448   ;;  %vm1348_vm10 = vcmask (!%p216_p9), 736256  }
  0x12   : > { %v3082_v7 = vsub.s32 (!%p216_p9), %v273_v5, %v3075_v4  ;;  %vm1754_vm11 = vcmask (!%p216_p9), 254976   ;;  %s2781_s12 = smul.u32 (!%p216_p9), 768, %s3045_s25 }
  0x15   : > { %s246_s9 = scalar_select %p245_p10, %s3045_s25, 1 }
  0x17   : > { %s2780_s10 = smul.u32 6, %s246_s9  ;;  %s242_s9 = sand.u32 1, %s2960_s22  }
  0x18   : > { %s3558_s25 = scalar_lea.sflag [#allocation3], %s242_s9 }
  0x19   : > { %s3088_s13 = scalar_lea.vmem %s3599_s0, %s2780_s10  ;;  %s2779_s10 = smul.u32 48, %s242_s9 }
  0x1a   : > { %v260_v8 = vld [vmem:[%s3088_s13] sm:$0x3f] }
  0x1b   : > { %v3092_v9 = vrot.slane %v260_v8, %v3082_v7  ;;  %v270_v10 = vcombine.high %v260_v8, %v260_v8  ;;  %v497_v11 = vld [vmem:[%s3088_s13] sm:$0x3f]  ;;  %s3523_s11 = scalar_lea.vmem [#allocation2], %s2779_s10 }
  0x1c   : > { %v511_v14 = vrot.slane %v497_v11, %v3082_v7  ;;  %v504_v15 = vcombine.high %v497_v11, %v497_v11  ;;  %v634_v17 = vld [vmem:[%s3088_s13] sm:$0x3f] }
  0x1d   : > { %286 = vrot.lane.b32.xlu0 %v3092_v9, %s2974_s14  ;;  %v3097_v12 = vrot.slane %v270_v10, %v3082_v7  ;;  %v3101_v13 = vcombine.high %v3092_v9, %v3092_v9  ;;  %v648_v19 = vrot.slane %v634_v17, %v3082_v7  ;;  %v641_v20 = vcombine.high %v634_v17, %v634_v17  ;;  %v771_v22 = vld [vmem:[%s3088_s13] sm:$0x3f]  ;;  %v2851_v10 = vld [vmem:[%s3600_s1 + $0x10] sm:$0xff]   ;;  %v2852_v17 = vld [vmem:[%s3600_s1 + $0x18] sm:$0xff]  }
  0x1e   : > { %v519_v16 = vcombine.high %v511_v14, %v511_v14  ;;  %v518_v18 = vrot.slane %v504_v15, %v3082_v7  ;;  %v785_v24 = vrot.slane %v771_v22, %v3082_v7  ;;  %v778_v25 = vcombine.high %v771_v22, %v771_v22  ;;  %v908_v27 = vld [vmem:[%s3088_s13] sm:$0x3f] }
  0x1f   : > { %290 = vrot.lane.b32.xlu1 %v3097_v12, %s2974_s14  ;;  %v656_v21 = vcombine.high %v648_v19, %v648_v19  ;;  %v655_v23 = vrot.slane %v641_v20, %v3082_v7  ;;  %v922_v29 = vrot.slane %v908_v27, %v3082_v7  ;;  %v915_v30 = vcombine.high %v908_v27, %v908_v27  ;;  %v1045_v32 = vld [vmem:[%s3088_s13] sm:$0x3f] }
  0x20   : > { %v793_v26 = vcombine.high %v785_v24, %v785_v24  ;;  %v792_v28 = vrot.slane %v778_v25, %v3082_v7  ;;  %v1059_v34 = vrot.slane %v1045_v32, %v3082_v7  ;;  %v1052_v35 = vcombine.high %v1045_v32, %v1045_v32  ;;  %v1182_v37 = vld [vmem:[%s3088_s13] sm:$0x3f] }
  0x21   : > { %288 = vrot.lane.b32.xlu0 %v3101_v13, %s2974_s14  ;;  %v930_v31 = vcombine.high %v922_v29, %v922_v29  ;;  %v929_v33 = vrot.slane %v915_v30, %v3082_v7  ;;  %v1196_v39 = vrot.slane %v1182_v37, %v3082_v7  ;;  %v1189_v40 = vcombine.high %v1182_v37, %v1182_v37  ;;  %v1319_v42 = vld [vmem:[%s3088_s13] sm:$0x3f]  ;;  %s2553_s13 = sshll.u32 %s3523_s11, 4  ;;  %s3550_s13 = int_to_ptr.vmem [resolvable:$true] %s2553_s13 }
  0x22   : > { %v1067_v36 = vcombine.high %v1059_v34, %v1059_v34  ;;  %v1066_v38 = vrot.slane %v1052_v35, %v3082_v7  ;;  %v1333_v44 = vrot.slane %v1319_v42, %v3082_v7  ;;  %v1326_v45 = vcombine.high %v1319_v42, %v1319_v42  ;;  %v2853_v25 = vld [vmem:[%s3600_s1 + $0x20] sm:$0xff]  }
  0x23   : > { %520 = vrot.lane.b32.xlu1 %v511_v14, %s2975_s15  ;;  %v1204_v41 = vcombine.high %v1196_v39, %v1196_v39  ;;  %v1203_v43 = vrot.slane %v1189_v40, %v3082_v7  ;;  %v408_v57 = vsel %vm299_vm1, %v3097_v12, 0  ;;  %v402_v60 = vsel %vm299_vm1, %v3092_v9, 0 }
  0x24   : > { %v1341_v46 = vcombine.high %v1333_v44, %v1333_v44  ;;  %v1340_v47 = vrot.slane %v1326_v45, %v3082_v7  ;;  %v2856_v45 = vld [vmem:[%s3600_s1 + $0x38] sm:$0xff]  }
  0x25   : > { %522 = vrot.lane.b32.xlu0 %v519_v16, %s2975_s15 }
  0x27   : > { %524 = vrot.lane.b32.xlu1 %v518_v18, %s2975_s15 }
  0x29   : > { %657 = vrot.lane.b32.xlu0 %v648_v19, %s2976_s16 }
  0x2b   : > { %659 = vrot.lane.b32.xlu1 %v656_v21, %s2976_s16 }
  0x2d   : > { %661 = vrot.lane.b32.xlu0 %v655_v23, %s2976_s16  ;;  %s3548_s16 = scalar_lea.hbm %s3605_s6, %s2781_s12 }
  0x2f   : > { %794 = vrot.lane.b32.xlu1 %v785_v24, %s2977_s17 }
  0x31   : > { %796 = vrot.lane.b32.xlu0 %v793_v26, %s2977_s17 }
  0x33   : > { %798 = vrot.lane.b32.xlu1 %v792_v28, %s2977_s17  ;;  %s2906_s17 = scalar_lea.vmem %s3550_s13, 768 }
  0x34   : > { %p2907_p11 = scmp.ne.s32.totalorder %s3550_s13, %s2906_s17 }
  0x35   : > { %931 = vrot.lane.b32.xlu0 %v922_v29, %s2978_s18 }
  0x36   : > { %p2908_p12 = pnand %p2907_p11, %p3062_p5 }
  0x37   : > { %933 = vrot.lane.b32.xlu1 %v930_v31, %s2978_s18  ;;  %v2854_v31 = vld [vmem:[%s3600_s1 + $0x28] sm:$0xff]  }
  0x38   : > { %p2909_p13 = pneg %p2908_p12 }
  0x39   : > { %935 = vrot.lane.b32.xlu0 %v929_v33, %s2978_s18  ;;  %s2986_s18 = smov [#allocation2]  }
  0x3b   : > { %1068 = vrot.lane.b32.xlu1 %v1059_v34, %s2979_s19 }
  0x3d   : > { %1070 = vrot.lane.b32.xlu0 %v1067_v36, %s2979_s19 }
  0x3f   : > { %1072 = vrot.lane.b32.xlu1 %v1066_v38, %s2979_s19  ;;  %v2855_v38 = vld [vmem:[%s3600_s1 + $0x30] sm:$0xff]   ;;  %s2910_s19 = sshll.u32 %s2986_s18, 4  ;;  %s2911_s19 = int_to_ptr.vmem [resolvable:$false] %s2910_s19 }
  0x40   : > { %p2913_p0 = scmp.lt.s32.totalorder %s3550_s13, %s2911_s19 }
  0x41   : > { %1205 = vrot.lane.b32.xlu0 %v1196_v39, %s2980_s20 }
  0x43   : > { %1207 = vrot.lane.b32.xlu1 %v1204_v41, %s2980_s20 }
  0x45   : > { %1209 = vrot.lane.b32.xlu0 %v1203_v43, %s2980_s20  ;;  %s2912_s20 = scalar_lea.vmem %s2911_s19, 1536 }
  0x46   : > { %p2914_p1 = scmp.lt.s32.totalorder %s2912_s20, %s2906_s17 }
  0x47   : > { %1342 = vrot.lane.b32.xlu1 %v1333_v44, %s2981_s26 }
  0x48   : > { %p2915_p2 = por %p2914_p1, %p2913_p0 }
  0x49   : > { %1344 = vrot.lane.b32.xlu0 %v1341_v46, %s2981_s26 }
  0x4a   : > { %p2916_p3 = pnand %p2915_p2, %p2909_p13 }
  0x4b   : > { %1346 = vrot.lane.b32.xlu1 %v1340_v47, %s2981_s26 }
  0x4d   : > { %1455 = vperm.xlu0 %2839, %v251_v48   ;;  %v2857_v48 = vld [vmem:[%s3600_s1 + $0x40] sm:$0xff]  }
  0x4f   : > { %1460 = vperm.xlu1 %2840, %v252_v49  }
  0x8f   : > { %v287_v50 = vpop.permute.xlu0 %286 }
  0x91   : > { %v291_v51 = vpop.permute.xlu1 %290 }
  0x92   : > { %v307_v52 = vsel %vm299_vm1, %v291_v51, 0 }
  0x93   : > { %v289_v54 = vpop.permute.xlu0 %288  ;;  %2694 = vmatpush3.bf16.msra.mxu1 %v307_v52 }
  0x94   : > { %v294_v55 = vsel %vm292_vm2, %v289_v54, %v291_v51  ;;  %v293_v56 = vsel %vm292_vm2, %v287_v50, %v289_v54  ;;  %2699 = vmatprep.subr.bf16.mxu1 %v2971_v3 }
  0x95   : > { %2623 = vmatprep.subr.msk.bf16.mxu0 %vm299_vm1, %v294_v55  ;;  %v301_v58 = vsel %vm299_vm1, %v293_v56, 0  ;;  %v521_v59 = vpop.permute.xlu1 %520 }
  0x96   : > { %310 = vmatpush1.bf16.msra.mxu0 %v301_v58  ;;  %2696 = vmatmul.mubr.msk.bf16.vlgmr.msra.gmra.mrb[0].mxu1 %vm295_vm3, %v2849_v53 }
  0x97   : > { %2627 = vmatprep.subr.msk.bf16.mxu0 %vm299_vm1, %v3101_v13  ;;  %2700 = vmatpush3.bf16.msra.mxu1 %v408_v57  ;;  %v523_v61 = vpop.permute.xlu0 %522 }
  0x98   : > { %2701 = vmatprep.mubr.msk.bf16.mxu1 %vm2972_vm0, %v2971_v3  ;;  %2705 = vmatprep.subr.bf16.mxu1 %v2971_v3  ;;  %v527_v8 = vsel %vm526_vm4, %v521_v59, %v523_v61 }
  0x99   : > { %2624 = vmatmul.mubr.msk.bf16.vlgmr.msra.gmra.mrb[0].mxu0 %vm295_vm3, %v2849_v53  ;;  %v525_v62 = vpop.permute.xlu1 %524  ;;  %v533_v11 = vsel %vm299_vm1, %v527_v8, 0 }
  0x9a   : > { %411 = vmatpush1.bf16.msra.mxu0 %v402_v60  ;;  %v528_v0 = vsel %vm526_vm4, %v523_v61, %v525_v62  ;;  %442 = vmatprep.mubr.bf16.mxu0 %v2973_v6  ;;  %v539_v2 = vsel %vm299_vm1, %v525_v62, 0 }
  0x9b   : > { %2633 = vmatprep.subr.msk.bf16.mxu0 %vm299_vm1, %v528_v0  ;;  %v658_v1 = vpop.permute.xlu0 %657 }
  0x9d   : > { %v660_v5 = vpop.permute.xlu1 %659 }
  0x9e   : > { %2702 = vmatmul.mubr.msk.bf16.vlgmr.msra.gmra.mrb[4].mxu1 %vm295_vm3, %v2850_v63  ;;  %v664_v19 = vsel %vm663_vm5, %v658_v1, %v660_v5 }
  0x9f   : > { %2706 = vmatpush3.bf16.msra.mxu1 %v539_v2  ;;  %2707 = vmatprep.mubr.msk.bf16.mxu1 %vm2972_vm0, %v2971_v3  ;;  %v662_v9 = vpop.permute.xlu0 %661  ;;  %v670_v22 = vsel %vm299_vm1, %v664_v19, 0 }
  0xa0   : > { %2711 = vmatprep.subr.bf16.mxu1 %v2971_v3  ;;  %v676_v13 = vsel %vm299_vm1, %v662_v9, 0  ;;  %v665_v14 = vsel %vm663_vm5, %v660_v5, %v662_v9 }
  0xa1   : > { %v795_v12 = vpop.permute.xlu1 %794 }
  0xa3   : > { %v797_v15 = vpop.permute.xlu0 %796 }
  0xa4   : > { %v801_v29 = vsel %vm800_vm6, %v795_v12, %v797_v15 }
  0xa5   : > { %2628 = vmatmul.mubr.msk.bf16.vlgmr.msra.gmra.mrb[0].mxu0 %vm295_vm3, %v2850_v63  ;;  %v799_v16 = vpop.permute.xlu1 %798  ;;  %v807_v32 = vsel %vm299_vm1, %v801_v29, 0 }
  0xa6   : > { %542 = vmatpush1.bf16.msra.mxu0 %v533_v11  ;;  %2708 = vmatmul.mubr.msk.bf16.vlgmr.msra.gmra.mrb[8].mxu1 %vm295_vm3, %v2851_v10  ;;  %v813_v20 = vsel %vm299_vm1, %v799_v16, 0  ;;  %v802_v23 = vsel %vm800_vm6, %v797_v15, %v799_v16 }
  0xa7   : > { %2712 = vmatpush3.bf16.msra.mxu1 %v676_v13  ;;  %2713 = vmatprep.mubr.msk.bf16.mxu1 %vm2972_vm0, %v2971_v3  ;;  %v932_v18 = vpop.permute.xlu0 %931 }
  0xa8   : > { %573 = vmatprep.mubr.bf16.mxu0 %v2973_v6  ;;  %2639 = vmatprep.subr.msk.bf16.mxu0 %vm299_vm1, %v665_v14 }
  0xa9   : > { %2717 = vmatprep.subr.bf16.mxu1 %v2971_v3  ;;  %v934_v21 = vpop.permute.xlu1 %933 }
  0xaa   : > { %v938_v40 = vsel %vm937_vm7, %v932_v18, %v934_v21 }
  0xab   : > { %v936_v24 = vpop.permute.xlu0 %935  ;;  %v944_v42 = vsel %vm299_vm1, %v938_v40, 0 }
  0xac   : > { %v950_v27 = vsel %vm299_vm1, %v936_v24, 0  ;;  %v939_v35 = vsel %vm937_vm7, %v934_v21, %v936_v24 }
  0xad   : > { %v1069_v26 = vpop.permute.xlu1 %1068 }
  0xae   : > { %2714 = vmatmul.mubr.msk.bf16.vlgmr.msra.gmra.mrb[12].mxu1 %vm295_vm3, %v2852_v17 }
  0xaf   : > { %2718 = vmatpush3.bf16.msra.mxu1 %v813_v20  ;;  %2719 = vmatprep.mubr.msk.bf16.mxu1 %vm2972_vm0, %v2971_v3  ;;  %v1071_v28 = vpop.permute.xlu0 %1070 }
  0xb0   : > { %2723 = vmatprep.subr.bf16.mxu1 %v2971_v3  ;;  %v1075_v47 = vsel %vm1074_vm8, %v1069_v26, %v1071_v28 }
  0xb1   : > { %2634 = vmatmul.mubr.msk.bf16.vlgmr.msra.gmra.mrb[0].mxu0 %vm295_vm3, %v2851_v10  ;;  %v1073_v30 = vpop.permute.xlu1 %1072  ;;  %v1081_v49 = vsel %vm299_vm1, %v1075_v47, 0  ;;  %v1556_v47 = vsub.s32 0, %v3075_v4 }
  0xb2   : > { %679 = vmatpush1.bf16.msra.mxu0 %v670_v22  ;;  %710 = vmatprep.mubr.bf16.mxu0 %v2973_v6  ;;  %v1087_v34 = vsel %vm299_vm1, %v1073_v30, 0  ;;  %v1076_v43 = vsel %vm1074_vm8, %v1071_v28, %v1073_v30 }
  0xb3   : > { %2645 = vmatprep.subr.msk.bf16.mxu0 %vm299_vm1, %v802_v23  ;;  %v1206_v33 = vpop.permute.xlu0 %1205 }
  0xb5   : > { %v1208_v36 = vpop.permute.xlu1 %1207 }
  0xb6   : > { %2720 = vmatmul.mubr.msk.bf16.vlgmr.msra.gmra.mrb[16].mxu1 %vm295_vm3, %v2853_v25 }
  0xb7   : > { %2724 = vmatpush3.bf16.msra.mxu1 %v950_v27  ;;  %2725 = vmatprep.mubr.msk.bf16.mxu1 %vm2972_vm0, %v2971_v3  ;;  %v1210_v37 = vpop.permute.xlu0 %1209 }
  0xb8   : > { %2729 = vmatprep.subr.bf16.mxu1 %v2971_v3  ;;  %v1224_v41 = vsel %vm299_vm1, %v1210_v37, 0  ;;  %v1213_v50 = vsel %vm1211_vm9, %v1208_v36, %v1210_v37 }
  0xb9   : > { %v1343_v39 = vpop.permute.xlu1 %1342 }
  0xbb   : > { %v1345_v51 = vpop.permute.xlu0 %1344 }
  0xbc   : > { %v1349_v54 = vsel %vm1348_vm10, %v1343_v39, %v1345_v51 }
  0xbd   : > { %2640 = vmatmul.mubr.msk.bf16.vlgmr.msra.gmra.mrb[0].mxu0 %vm295_vm3, %v2852_v17  ;;  %v1347_v44 = vpop.permute.xlu1 %1346  ;;  %v1355_v55 = vsel %vm299_vm1, %v1349_v54, 0 }
  0xbe   : > { %816 = vmatpush1.bf16.msra.mxu0 %v807_v32  ;;  %2726 = vmatmul.mubr.msk.bf16.vlgmr.msra.gmra.mrb[20].mxu1 %vm295_vm3, %v2854_v31  ;;  %v1361_v46 = vsel %vm299_vm1, %v1347_v44, 0  ;;  %v1350_v53 = vsel %vm1348_vm10, %v1345_v51, %v1347_v44  ;;  %v1564_v51 = vsub.s32 2, %v3075_v4 }
  0xbf   : > { %2730 = vmatpush3.bf16.msra.mxu1 %v1087_v34  ;;  %2731 = vmatprep.mubr.msk.bf16.mxu1 %vm2972_vm0, %v2971_v3 }
  0xc0   : > { %847 = vmatprep.mubr.bf16.mxu0 %v2973_v6  ;;  %2651 = vmatprep.subr.msk.bf16.mxu0 %vm299_vm1, %v939_v35 }
  0xc1   : > { %2735 = vmatprep.subr.bf16.mxu1 %v2971_v3 }
  0xc6   : > { %2732 = vmatmul.mubr.msk.bf16.vlgmr.msra.gmra.mrb[24].mxu1 %vm295_vm3, %v2855_v38 }
  0xc7   : > { %2736 = vmatpush3.bf16.msra.mxu1 %v1224_v41  ;;  %2737 = vmatprep.mubr.msk.bf16.mxu1 %vm2972_vm0, %v2971_v3 }
  0xc8   : > { %2741 = vmatprep.subr.bf16.mxu1 %v2971_v3 }
  0xc9   : > { %2646 = vmatmul.mubr.msk.bf16.vlgmr.msra.gmra.mrb[0].mxu0 %vm295_vm3, %v2853_v25 }
  0xca   : > { %953 = vmatpush1.bf16.msra.mxu0 %v944_v42  ;;  %984 = vmatprep.mubr.bf16.mxu0 %v2973_v6 }
  0xcb   : > { %2657 = vmatprep.subr.msk.bf16.mxu0 %vm299_vm1, %v1076_v43 }
  0xce   : > { %2738 = vmatmul.mubr.msk.bf16.vlgmr.msra.gmra.mrb[28].mxu1 %vm295_vm3, %v2856_v45 }
  0xcf   : > { %2742 = vmatpush3.bf16.msra.mxu1 %v1361_v46  ;;  %2743 = vmatprep.mubr.msk.bf16.mxu1 %vm2972_vm0, %v2971_v3  ;;  %v1212_v3 = vsel %vm1211_vm9, %v1206_v33, %v1208_v36  ;;  %vm2534_vm0 = vcmask 261120  }
  0xd0   : > { %v1218_v52 = vsel %vm299_vm1, %v1212_v3, 0 }
  0xd5   : > { %2652 = vmatmul.mubr.msk.bf16.vlgmr.msra.gmra.mrb[0].mxu0 %vm295_vm3, %v2854_v31 }
  0xd6   : > { %1090 = vmatpush1.bf16.msra.mxu0 %v1081_v49  ;;  %2744 = vmatmul.mubr.msk.bf16.vlgmr.msra.gmra.mrb[32].mxu1 %vm295_vm3, %v2857_v48  ;;  %v257_v49 = vld [vmem:[%s3604_s5] sm:$0x7] }
  0xd7   : > { %1121 = vmatprep.mubr.bf16.mxu0 %v2973_v6  ;;  %2663 = vmatprep.subr.msk.bf16.mxu0 %vm299_vm1, %v1213_v50  ;;  %v1557_v50 = vrot.slane %v257_v49, %v1556_v47 }
  0xe1   : > { %2658 = vmatmul.mubr.msk.bf16.vlgmr.msra.gmra.mrb[0].mxu0 %vm295_vm3, %v2855_v38 }
  0xe2   : > { %1227 = vmatpush1.bf16.msra.mxu0 %v1218_v52  ;;  %1258 = vmatprep.mubr.bf16.mxu0 %v2973_v6  ;;  %v1456_v52 = vpop.permute.xlu0 %1455 }
  0xe3   : > { %2669 = vmatprep.subr.msk.bf16.mxu0 %vm299_vm1, %v1350_v53 }
  0xed   : > { %2664 = vmatmul.mubr.msk.bf16.vlgmr.msra.gmra.mrb[0].mxu0 %vm295_vm3, %v2856_v45 }
  0xee   : > { %1364 = vmatpush1.bf16.msra.mxu0 %v1355_v55  ;;  %1395 = vmatprep.mubr.bf16.mxu0 %v2973_v6  ;;  %v1565_v55 = vrot.slane %v257_v49, %v1564_v51 }
  0xf9   : > { %2670 = vmatmul.mubr.msk.bf16.vlgmr.msra.gmra.mrb[0].mxu0 %vm295_vm3, %v2857_v48  ;;  %v1560_v48 = vsub.s32 1, %v3075_v4 }
  0xfb   : > { %v1561_v3 = vrot.slane %v257_v49, %v1560_v48 }
  0xfd   : > { %v1566_v53 = vcombine.low %v1557_v50, %v1561_v3 }
 0x169   : > { %v386_v56 = vpop.f32.mrb[0].mxu1 }
 0x16a   : > { %v2697_v57 = vpop.f32.mrb[1].mxu1 }
 0x16b   : > { %v389_v58 = vpop.f32.mrb[2].mxu1 }
 0x16c   : > { %v2698_v59 = vpop.f32.mrb[3].mxu1 }
 0x171   : > { %v487_v60 = vpop.f32.mrb[4].mxu1 }
 0x172   : > { %v488_v61 = vadd.f32 %v487_v60, %v386_v56  ;;  %v2703_v62 = vpop.f32.mrb[5].mxu1  ;;  %v1461_v56 = vpop.permute.xlu1 %1460 }
 0x173   : > { %v490_v63 = vpop.f32.mrb[6].mxu1 }
 0x174   : > { %v491_v0 = vadd.f32 %v490_v63, %v389_v58  ;;  %v2704_v1 = vpop.f32.mrb[7].mxu1  ;;  %v1573_v58 = vrot.slane %v1566_v53, %v3082_v7  ;;  %v1580_v63 = vrot.slane %v1565_v55, %v3082_v7 }
 0x179   : > { %v618_v2 = vpop.f32.mrb[8].mxu1 }
 0x17a   : > { %v627_v5 = vadd.f32 %v618_v2, %v488_v61  ;;  %v2709_v8 = vpop.f32.mrb[9].mxu1 }
 0x17b   : > { %v621_v9 = vpop.f32.mrb[10].mxu1 }
 0x17c   : > { %v630_v10 = vadd.f32 %v621_v9, %v491_v0  ;;  %v2710_v11 = vpop.f32.mrb[11].mxu1 }
 0x181   : > { %v755_v12 = vpop.f32.mrb[12].mxu1 }
 0x182   : > { %v764_v6 = vadd.f32 %v755_v12, %v627_v5  ;;  %v2715_v13 = vpop.f32.mrb[13].mxu1 }
 0x183   : > { %v758_v14 = vpop.f32.mrb[14].mxu1  ;;  %v3258_v13 = vcombine.low %v1573_v58, %v1580_v63 }
 0x184   : > { %v767_v15 = vadd.f32 %v758_v14, %v630_v10  ;;  %v2716_v16 = vpop.f32.mrb[15].mxu1 }
 0x189   : > { %v892_v17 = vpop.f32.mrb[16].mxu1 }
 0x18a   : > { %v901_v18 = vadd.f32 %v892_v17, %v764_v6  ;;  %v2721_v19 = vpop.f32.mrb[17].mxu1 }
 0x18b   : > { %v895_v20 = vpop.f32.mrb[18].mxu1 }
 0x18c   : > { %v904_v21 = vadd.f32 %v895_v20, %v767_v15  ;;  %v2722_v22 = vpop.f32.mrb[19].mxu1 }
 0x191   : > { %v1029_v23 = vpop.f32.mrb[20].mxu1 }
 0x192   : > { %v1038_v24 = vadd.f32 %v1029_v23, %v901_v18  ;;  %v2727_v25 = vpop.f32.mrb[21].mxu1 }
 0x193   : > { %v1032_v26 = vpop.f32.mrb[22].mxu1 }
 0x194   : > { %v1041_v27 = vadd.f32 %v1032_v26, %v904_v21  ;;  %v2728_v28 = vpop.f32.mrb[23].mxu1 }
 0x199   : > { %v1166_v29 = vpop.f32.mrb[24].mxu1 }
 0x19a   : > { %v1175_v30 = vadd.f32 %v1166_v29, %v1038_v24  ;;  %v2733_v31 = vpop.f32.mrb[25].mxu1 }
 0x19b   : > { %v1169_v32 = vpop.f32.mrb[26].mxu1 }
 0x19c   : > { %v1178_v33 = vadd.f32 %v1169_v32, %v1041_v27  ;;  %v2734_v34 = vpop.f32.mrb[27].mxu1 }
 0x1a1   : > { %v1303_v35 = vpop.f32.mrb[28].mxu1 }
 0x1a2   : > { %v1312_v36 = vadd.f32 %v1303_v35, %v1175_v30  ;;  %v2739_v37 = vpop.f32.mrb[29].mxu1 }
 0x1a3   : > { %v1306_v38 = vpop.f32.mrb[30].mxu1 }
 0x1a4   : > { %v1315_v39 = vadd.f32 %v1306_v38, %v1178_v33  ;;  %v2740_v40 = vpop.f32.mrb[31].mxu1 }
 0x1a9   : > { %v1440_v41 = vpop.f32.mrb[32].mxu1 }
 0x1aa   : > { %v1449_v42 = vadd.f32 %v1440_v41, %v1312_v36  ;;  %v2745_v43 = vpop.f32.mrb[33].mxu1 }
 0x1ab   : > { %v1443_v44 = vpop.f32.mrb[34].mxu1 }
 0x1ac   : > { %v1452_v45 = vadd.f32 %v1443_v44, %v1315_v39  ;;  %v2746_v46 = vpop.f32.mrb[35].mxu1  ;;  %v1465_v54 = vadd.f32 %v1456_v52, %v1449_v42 }
 0x1ae   : > { %v1477_v59 = vcombine.high %v1465_v54, %v1465_v54  ;;  %v1468_v60 = vadd.f32 %v1461_v56, %v1452_v45  ;;  %v1498_v11 = vrot.slane %v1465_v54, %v3082_v7 }
 0x1b0   : > { %v1505_v12 = vrot.slane %v1477_v59, %v3082_v7  ;;  %v1512_v6 = vcombine.high %v1468_v60, %v1468_v60  ;;  %v1533_v22 = vrot.slane %v1468_v60, %v3082_v7 }
 0x1b2   : > { %v1540_v23 = vrot.slane %v1512_v6, %v3082_v7 }
 0x1cc   : > { %v1397_v57 = vpop.f32.mrb[0].mxu0 }
 0x1cd   : > { %v1463_v61 = vadd.f32 %v1456_v52, %v1397_v57  ;;  %v1399_v62 = vpop.f32.mrb[1].mxu0 }
 0x1ce   : > { %v1464_v0 = vadd.f32 %v1456_v52, %v1399_v62  ;;  %v1401_v1 = vpop.f32.mrb[2].mxu0 }
 0x1cf   : > { %v1466_v2 = vadd.f32 %v1461_v56, %v1401_v1  ;;  %v1403_v5 = vpop.f32.mrb[3].mxu0 }
 0x1d0   : > { %v1475_v8 = vcombine.low %v1463_v61, %v1464_v0  ;;  %v1476_v9 = vcombine.high %v1463_v61, %v1464_v0  ;;  %v1467_v10 = vadd.f32 %v1461_v56, %v1403_v5 }
 0x1d2   : > { %v1484_v14 = vrot.slane %v1475_v8, %v3082_v7  ;;  %v1491_v15 = vrot.slane %v1476_v9, %v3082_v7  ;;  %v1510_v16 = vcombine.low %v1466_v2, %v1467_v10  ;;  %v1511_v17 = vcombine.high %v1466_v2, %v1467_v10 }
 0x1d4   : > { %v3262_v18 = vcombine.low %v1484_v14, %v1498_v11  ;;  %v3264_v19 = vcombine.high %v1484_v14, %v1498_v11  ;;  %v3266_v20 = vcombine.low %v1491_v15, %v1505_v12  ;;  %v3268_v21 = vcombine.high %v1491_v15, %v1505_v12 }
 0x1d5   : > { %v1519_v24 = vrot.slane %v1510_v16, %v3082_v7  ;;  %v1526_v25 = vrot.slane %v1511_v17, %v3082_v7 }
 0x1d6   : > { %v1584_v26 = vmul.f32 %v3258_v13, %v3264_v19  ;;  %v1583_v27 = vmul.f32 %v3258_v13, %v3262_v18  ;;  %v1586_v28 = vmul.f32 %v3258_v13, %v3268_v21  ;;  %v1585_v29 = vmul.f32 %v3258_v13, %v3266_v20 }
 0x1d7   : > { %v3282_v30 = vcombine.low %v1519_v24, %v1533_v22  ;;  %v3284_v31 = vcombine.high %v1519_v24, %v1533_v22  ;;  %v3286_v32 = vcombine.low %v1526_v25, %v1540_v23  ;;  %v3288_v33 = vcombine.high %v1526_v25, %v1540_v23 }
 0x1d8   : > { %v1615_v34 = vcombine.high %v1584_v26, %v1584_v26  ;;  %v1622_v35 = vrot.slane %v1584_v26, %v3082_v7  ;;  %v1599_v36 = vcombine.high %v1583_v27, %v1583_v27  ;;  %v1606_v37 = vrot.slane %v1583_v27, %v3082_v7 }
 0x1d9   : > { %v1647_v38 = vcombine.high %v1586_v28, %v1586_v28  ;;  %v1654_v39 = vrot.slane %v1586_v28, %v3082_v7  ;;  %v1631_v40 = vcombine.high %v1585_v29, %v1585_v29  ;;  %v1638_v44 = vrot.slane %v1585_v29, %v3082_v7 }
 0x1da   : > { %v1629_v41 = vrot.slane %v1615_v34, %v3082_v7  ;;  %v1630_v42 = vcombine.high %v1622_v35, %v1622_v35  ;;  %v1613_v43 = vrot.slane %v1599_v36, %v3082_v7  ;;  %v1614_v45 = vcombine.high %v1606_v37, %v1606_v37 }
 0x1db   : > { %v1662_v46 = vcombine.high %v1654_v39, %v1654_v39  ;;  %v1759_v47 = vsel %vm299_vm1, %v1622_v35, 0.0  ;;  %v1751_v49 = vsel %vm299_vm1, %v1606_v37, 0.0  ;;  %v1661_v50 = vrot.slane %v1647_v38, %v3082_v7 }
 0x1dc   : > { %v1760_v48 = vsel %vm299_vm1, %v1630_v42, 0.0  ;;  %v1762_v51 = vsel %vm1754_vm11, %v1629_v41, 0.0  ;;  %v1752_v52 = vsel %vm299_vm1, %v1614_v45, 0.0  ;;  %v1755_v55 = vsel %vm1754_vm11, %v1613_v43, 0.0 }
 0x1dd   : > { %v1761_v3 = vadd.f32 %v1760_v48, %v1759_v47  ;;  %v1774_v53 = vsel %vm299_vm1, %v1662_v46, 0.0  ;;  %v1753_v54 = vadd.f32 %v1752_v52, %v1751_v49  ;;  %v1645_v56 = vrot.slane %v1631_v40, %v3082_v7 }
 0x1de   : > { %v1646_v57 = vcombine.high %v1638_v44, %v1638_v44  ;;  %v1773_v59 = vsel %vm299_vm1, %v1654_v39, 0.0  ;;  %v1588_v60 = vmul.f32 %v3258_v13, %v3284_v31  ;;  %v1587_v61 = vmul.f32 %v3258_v13, %v3282_v30 }
 0x1df   : > { %v1763_v58 = vadd.f32 %v1762_v51, %v1761_v3  ;;  %v1756_v62 = vadd.f32 %v1755_v55, %v1753_v54  ;;  %v1775_v63 = vadd.f32 %v1774_v53, %v1773_v59  ;;  %v1766_v0 = vsel %vm299_vm1, %v1638_v44, 0.0 }
 0x1e0   : > { %v1767_v1 = vsel %vm299_vm1, %v1646_v57, 0.0  ;;  %v1679_v5 = vcombine.high %v1588_v60, %v1588_v60  ;;  %v1686_v8 = vrot.slane %v1588_v60, %v3082_v7  ;;  %v1663_v9 = vcombine.high %v1587_v61, %v1587_v61 }
 0x1e1   : > { %1764 = vadd.xlane.f32.xlu0 %v1763_v58  ;;  %v1768_v2 = vadd.f32 %v1767_v1, %v1766_v0  ;;  %1757 = vadd.xlane.f32.xlu1 %v1756_v62  ;;  %v1769_v10 = vsel %vm1754_vm11, %v1645_v56, 0.0  ;;  %v1670_v11 = vrot.slane %v1587_v61, %v3082_v7  ;;  %v1590_v12 = vmul.f32 %v3258_v13, %v3288_v33 }
 0x1e2   : > { %v1589_v6 = vmul.f32 %v3258_v13, %v3286_v32  ;;  %v1776_v14 = vsel %vm1754_vm11, %v1661_v50, 0.0  ;;  %v1693_v16 = vrot.slane %v1679_v5, %v3082_v7  ;;  %v1694_v17 = vcombine.high %v1686_v8, %v1686_v8 }
 0x1e3   : > { %v1770_v15 = vadd.f32 %v1769_v10, %v1768_v2  ;;  %v1777_v22 = vadd.f32 %v1776_v14, %v1775_v63  ;;  %v1677_v23 = vrot.slane %v1663_v9, %v3082_v7  ;;  %v1678_v24 = vcombine.high %v1670_v11, %v1670_v11 }
 0x1e4   : > { %v1711_v25 = vcombine.high %v1590_v12, %v1590_v12  ;;  %v1787_v26 = vsel %vm299_vm1, %v1686_v8, 0.0  ;;  %v1788_v27 = vsel %vm299_vm1, %v1694_v17, 0.0  ;;  %v1718_v28 = vrot.slane %v1590_v12, %v3082_v7 }
 0x1e5   : > { %1771 = vadd.xlane.f32.xlu0 %v1770_v15  ;;  %v1695_v29 = vcombine.high %v1589_v6, %v1589_v6  ;;  %1778 = vadd.xlane.f32.xlu1 %v1777_v22  ;;  %v1789_v34 = vadd.f32 %v1788_v27, %v1787_v26  ;;  %v1790_v35 = vsel %vm1754_vm11, %v1693_v16, 0.0  ;;  %v1780_v36 = vsel %vm299_vm1, %v1670_v11, 0.0 }
 0x1e6   : > { %v1781_v37 = vsel %vm299_vm1, %v1678_v24, 0.0  ;;  %v1725_v39 = vrot.slane %v1711_v25, %v3082_v7  ;;  %v1726_v40 = vcombine.high %v1718_v28, %v1718_v28  ;;  %v1702_v41 = vrot.slane %v1589_v6, %v3082_v7 }
 0x1e7   : > { %v1782_v38 = vadd.f32 %v1781_v37, %v1780_v36  ;;  %v1791_v42 = vadd.f32 %v1790_v35, %v1789_v34  ;;  %v1783_v43 = vsel %vm1754_vm11, %v1677_v23, 0.0  ;;  %v1801_v44 = vsel %vm299_vm1, %v1718_v28, 0.0 }
 0x1e8   : > { %v1802_v46 = vsel %vm299_vm1, %v1726_v40, 0.0  ;;  %v1709_v47 = vrot.slane %v1695_v29, %v3082_v7  ;;  %v1710_v48 = vcombine.high %v1702_v41, %v1702_v41  ;;  %v1804_v50 = vsel %vm1754_vm11, %v1725_v39, 0.0 }
 0x1e9   : > { %v1784_v45 = vadd.f32 %v1783_v43, %v1782_v38  ;;  %1792 = vadd.xlane.f32.xlu1 %v1791_v42  ;;  %v1803_v49 = vadd.f32 %v1802_v46, %v1801_v44  ;;  %v1794_v3 = vsel %vm299_vm1, %v1702_v41, 0.0 }
 0x1ea   : > { %v1795_v51 = vsel %vm299_vm1, %v1710_v48, 0.0  ;;  %v1797_v54 = vsel %vm1754_vm11, %v1709_v47, 0.0 }
 0x1eb   : > { %1785 = vadd.xlane.f32.xlu0 %v1784_v45  ;;  %v1805_v52 = vadd.f32 %v1804_v50, %v1803_v49  ;;  %v1796_v53 = vadd.f32 %v1795_v51, %v1794_v3 }
 0x1ed   : > { %1806 = vadd.xlane.f32.xlu1 %v1805_v52  ;;  %v1798_v55 = vadd.f32 %v1797_v54, %v1796_v53 }
 0x1ef   : > { %1799 = vadd.xlane.f32.xlu0 %v1798_v55 }
 0x26e   : > { %v1765_v56 = vpop.xlane.xlu0 %1764  ;;  %v1758_v58 = vpop.xlane.xlu1 %1757 }
 0x26f   : > { %v1815_v57 = vsel %vm299_vm1, %v1765_v56, 0.0  ;;  %v1808_v60 = vsel %vm299_vm1, %v1758_v58, 0.0 }
 0x270   : > { %v1816_v59 = vrot.slane %v1815_v57, 4  ;;  %v1809_v61 = vrot.slane %v1808_v60, 4 }
 0x272   : > { %v1817_v62 = vadd.f32 %v1816_v59, %v1815_v57  ;;  %v1772_v63 = vpop.xlane.xlu0 %1771  ;;  %v1810_v0 = vadd.f32 %v1809_v61, %v1808_v60  ;;  %v1779_v1 = vpop.xlane.xlu1 %1778 }
 0x273   : > { %v1822_v2 = vsel %vm299_vm1, %v1772_v63, 0.0  ;;  %v1829_v8 = vsel %vm299_vm1, %v1779_v1, 0.0 }
 0x274   : > { %v1818_v5 = vrot.slane %v1817_v62, 2  ;;  %v1823_v9 = vrot.slane %v1822_v2, 4  ;;  %v1811_v10 = vrot.slane %v1810_v0, 2  ;;  %v1830_v11 = vrot.slane %v1829_v8, 4 }
 0x276   : > { %v1819_v12 = vadd.f32 %v1818_v5, %v1817_v62  ;;  %v1824_v6 = vadd.f32 %v1823_v9, %v1822_v2  ;;  %v1812_v14 = vadd.f32 %v1811_v10, %v1810_v0  ;;  %v1831_v15 = vadd.f32 %v1830_v11, %v1829_v8  ;;  %v1793_v16 = vpop.xlane.xlu1 %1792 }
 0x277   : > { %v1843_v23 = vsel %vm299_vm1, %v1793_v16, 0.0 }
 0x278   : > { %v1820_v17 = vrot.slane %v1819_v12, 1  ;;  %v1825_v22 = vrot.slane %v1824_v6, 2  ;;  %v1786_v24 = vpop.xlane.xlu0 %1785  ;;  %v1813_v25 = vrot.slane %v1812_v14, 1  ;;  %v1832_v26 = vrot.slane %v1831_v15, 2 }
 0x279   : > { %v1844_v27 = vrot.slane %v1843_v23, 4  ;;  %v1836_v28 = vsel %vm299_vm1, %v1786_v24, 0.0 }
 0x27a   : > { %v1821_v29 = vadd.f32 %v1820_v17, %v1819_v12  ;;  %v1826_v34 = vadd.f32 %v1825_v22, %v1824_v6  ;;  %v1837_v35 = vrot.slane %v1836_v28, 4  ;;  %v1814_v36 = vadd.f32 %v1813_v25, %v1812_v14  ;;  %v1807_v39 = vpop.xlane.xlu1 %1806 }
 0x27b   : > { %v1833_v37 = vadd.f32 %v1832_v26, %v1831_v15  ;;  %v1845_v38 = vadd.f32 %v1844_v27, %v1843_v23  ;;  %v1857_v43 = vsel %vm299_vm1, %v1807_v39, 0.0 }
 0x27c   : > { %v1865_v40 = vmul.f32 0.001953125, %v1821_v29  ;;  %v1827_v41 = vrot.slane %v1826_v34, 1  ;;  %v1838_v42 = vadd.f32 %v1837_v35, %v1836_v28  ;;  %v1864_v44 = vmul.f32 0.001953125, %v1814_v36  ;;  %v1800_v48 = vpop.xlane.xlu0 %1799 }
 0x27d   : > { %v1834_v45 = vrot.slane %v1833_v37, 1  ;;  %v1846_v46 = vrot.slane %v1845_v38, 2  ;;  %v1858_v47 = vrot.slane %v1857_v43, 4  ;;  %v1850_v51 = vsel %vm299_vm1, %v1800_v48, 0.0 }
 0x27e   : > { %v3346_v49 = vsub.f32 %v3264_v19, %v1865_v40  ;;  %v1828_v50 = vadd.f32 %v1827_v41, %v1826_v34  ;;  %v1839_v3 = vrot.slane %v1838_v42, 2  ;;  %v3350_v52 = vsub.f32 %v3262_v18, %v1864_v44 }
 0x27f   : > { %v1835_v53 = vadd.f32 %v1834_v45, %v1833_v37  ;;  %v1847_v54 = vadd.f32 %v1846_v46, %v1845_v38  ;;  %v1859_v55 = vadd.f32 %v1858_v47, %v1857_v43  ;;  %v1851_v59 = vrot.slane %v1850_v51, 4 }
 0x280   : > { %v1881_v56 = vmul.f32 %v3346_v49, %v3346_v49  ;;  %v1866_v57 = vmul.f32 0.001953125, %v1828_v50  ;;  %v1840_v58 = vadd.f32 %v1839_v3, %v1838_v42  ;;  %v1880_v19 = vmul.f32 %v3350_v52, %v3350_v52 }
 0x281   : > { %v1867_v60 = vmul.f32 0.001953125, %v1835_v53  ;;  %v1848_v61 = vrot.slane %v1847_v54, 1  ;;  %v1860_v62 = vrot.slane %v1859_v55, 2  ;;  %v1852_v0 = vadd.f32 %v1851_v59, %v1850_v51 }
 0x282   : > { %v3357_v63 = vsub.f32 %v3266_v20, %v1866_v57  ;;  %v1841_v18 = vrot.slane %v1840_v58, 1  ;;  %v1889_v1 = vmul.f32 %v1881_v56, %v3258_v13  ;;  %v1888_v9 = vmul.f32 %v1880_v19, %v3258_v13 }
 0x283   : > { %v3361_v2 = vsub.f32 %v3268_v21, %v1867_v60  ;;  %v1849_v5 = vadd.f32 %v1848_v61, %v1847_v54  ;;  %v1861_v8 = vadd.f32 %v1860_v62, %v1859_v55  ;;  %v1853_v11 = vrot.slane %v1852_v0, 2 }
 0x284   : > { %v1842_v10 = vadd.f32 %v1841_v18, %v1840_v58  ;;  %v1920_v12 = vcombine.high %v1889_v1, %v1889_v1  ;;  %v1882_v6 = vmul.f32 %v3357_v63, %v3357_v63  ;;  %v1927_v15 = vrot.slane %v1889_v1, %v3082_v7 }
 0x285   : > { %v1869_v14 = vmul.f32 0.001953125, %v1849_v5  ;;  %v1862_v20 = vrot.slane %v1861_v8, 1  ;;  %v1854_v17 = vadd.f32 %v1853_v11, %v1852_v0  ;;  %v1904_v21 = vcombine.high %v1888_v9, %v1888_v9 }
 0x286   : > { %v1868_v16 = vmul.f32 0.001953125, %v1842_v10  ;;  %v1934_v22 = vrot.slane %v1920_v12, %v3082_v7  ;;  %v1883_v23 = vmul.f32 %v3361_v2, %v3361_v2  ;;  %v1935_v26 = vcombine.high %v1927_v15, %v1927_v15 }
 0x287   : > { %v3371_v24 = vsub.f32 %v3284_v31, %v1869_v14  ;;  %v1863_v25 = vadd.f32 %v1862_v20, %v1861_v8  ;;  %v1855_v28 = vrot.slane %v1854_v17, 1  ;;  %v2063_v29 = vsel %vm299_vm1, %v1927_v15, 0.0 }
 0x288   : > { %v3374_v27 = vsub.f32 %v3282_v30, %v1868_v16  ;;  %v1911_v34 = vrot.slane %v1888_v9, %v3082_v7  ;;  %v2064_v36 = vsel %vm299_vm1, %v1935_v26, 0.0  ;;  %v2066_v37 = vsel %vm1754_vm11, %v1934_v22, 0.0 }
 0x289   : > { %v1871_v35 = vmul.f32 0.001953125, %v1863_v25  ;;  %v1918_v38 = vrot.slane %v1904_v21, %v3082_v7  ;;  %v1885_v31 = vmul.f32 %v3371_v24, %v3371_v24  ;;  %v1856_v39 = vadd.f32 %v1855_v28, %v1854_v17 }
 0x28a   : > { %v2065_v40 = vadd.f32 %v2064_v36, %v2063_v29  ;;  %v1919_v41 = vcombine.high %v1911_v34, %v1911_v34  ;;  %v1884_v30 = vmul.f32 %v3374_v27, %v3374_v27  ;;  %v2056_v43 = vsel %vm299_vm1, %v1911_v34, 0.0 }
 0x28b   : > { %v3386_v42 = vsub.f32 %v3288_v33, %v1871_v35  ;;  %v1891_v44 = vmul.f32 %v1883_v23, %v3258_v13  ;;  %v1870_v45 = vmul.f32 0.001953125, %v1856_v39  ;;  %v1890_v48 = vmul.f32 %v1882_v6, %v3258_v13 }
 0x28c   : > { %v2067_v46 = vadd.f32 %v2066_v37, %v2065_v40  ;;  %v2057_v47 = vsel %vm299_vm1, %v1919_v41, 0.0  ;;  %v2059_v3 = vsel %vm1754_vm11, %v1918_v38, 0.0  ;;  %v1893_v56 = vmul.f32 %v1885_v31, %v3258_v13 }
 0x28d   : > { %v2058_v50 = vadd.f32 %v2057_v47, %v2056_v43  ;;  %v1952_v51 = vcombine.high %v1891_v44, %v1891_v44  ;;  %v1959_v53 = vrot.slane %v1891_v44, %v3082_v7  ;;  %v3395_v54 = vsub.f32 %v3286_v32, %v1870_v45 }
 0x28e   : > { %2068 = vadd.xlane.f32.xlu1 %v2067_v46  ;;  %v1936_v33 = vcombine.high %v1890_v48, %v1890_v48  ;;  %v1943_v55 = vrot.slane %v1890_v48, %v3082_v7  ;;  %v1887_v57 = vmul.f32 %v3386_v42, %v3386_v42  ;;  %v1984_v1 = vcombine.high %v1893_v56, %v1893_v56 }
 0x28f   : > { %v2060_v58 = vadd.f32 %v2059_v3, %v2058_v50  ;;  %v1966_v59 = vrot.slane %v1952_v51, %v3082_v7  ;;  %v1967_v19 = vcombine.high %v1959_v53, %v1959_v53  ;;  %v1886_v60 = vmul.f32 %v3395_v54, %v3395_v54 }
 0x290   : > { %v2077_v61 = vsel %vm299_vm1, %v1959_v53, 0.0  ;;  %v1950_v32 = vrot.slane %v1936_v33, %v3082_v7  ;;  %v1951_v62 = vcombine.high %v1943_v55, %v1943_v55  ;;  %v2070_v0 = vsel %vm299_vm1, %v1943_v55, 0.0 }
 0x291   : > { %2061 = vadd.xlane.f32.xlu0 %v2060_v58  ;;  %v2078_v18 = vsel %vm299_vm1, %v1967_v19, 0.0  ;;  %v1991_v5 = vrot.slane %v1893_v56, %v3082_v7  ;;  %v2080_v9 = vsel %vm1754_vm11, %v1966_v59, 0.0  ;;  %v1892_v11 = vmul.f32 %v1884_v30, %v3258_v13  ;;  %v254_v59 = vld [vmem:[%s3602_s3 + $0x8] sm:$0xff]  ;;  %v255_v19 = vld [vmem:[%s3603_s4] sm:$0xff] }
 0x292   : > { %v2079_v8 = vadd.f32 %v2078_v18, %v2077_v61  ;;  %v2071_v10 = vsel %vm299_vm1, %v1951_v62, 0.0  ;;  %v2073_v6 = vsel %vm1754_vm11, %v1950_v32, 0.0  ;;  %v1998_v14 = vrot.slane %v1984_v1, %v3082_v7  ;;  %v256_v61 = vld [vmem:[%s3603_s4 + $0x8] sm:$0xff] }
 0x293   : > { %v2072_v12 = vadd.f32 %v2071_v10, %v2070_v0  ;;  %v1999_v20 = vcombine.high %v1991_v5, %v1991_v5  ;;  %v1968_v16 = vcombine.high %v1892_v11, %v1892_v11  ;;  %v1975_v17 = vrot.slane %v1892_v11, %v3082_v7 }
 0x294   : > { %v2081_v15 = vadd.f32 %v2080_v9, %v2079_v8  ;;  %v1895_v22 = vmul.f32 %v1887_v57, %v3258_v13  ;;  %v2091_v23 = vsel %vm299_vm1, %v1991_v5, 0.0  ;;  %v1894_v26 = vmul.f32 %v1886_v60, %v3258_v13  ;;  %v253_v60 = vld [vmem:[%s3602_s3] sm:$0xff] }
 0x295   : > { %v2074_v21 = vadd.f32 %v2073_v6, %v2072_v12  ;;  %v2092_v25 = vsel %vm299_vm1, %v1999_v20, 0.0  ;;  %v2094_v29 = vsel %vm1754_vm11, %v1998_v14, 0.0  ;;  %v1982_v34 = vrot.slane %v1968_v16, %v3082_v7 }
 0x296   : > { %2082 = vadd.xlane.f32.xlu1 %v2081_v15  ;;  %v2093_v28 = vadd.f32 %v2092_v25, %v2091_v23  ;;  %v1983_v35 = vcombine.high %v1975_v17, %v1975_v17  ;;  %v2016_v36 = vcombine.high %v1895_v22, %v1895_v22  ;;  %v2023_v37 = vrot.slane %v1895_v22, %v3082_v7 }
 0x297   : > { %2075 = vadd.xlane.f32.xlu0 %v2074_v21  ;;  %v2000_v38 = vcombine.high %v1894_v26, %v1894_v26  ;;  %v2007_v31 = vrot.slane %v1894_v26, %v3082_v7  ;;  %v2084_v40 = vsel %vm299_vm1, %v1975_v17, 0.0  ;;  %v2087_v44 = vsel %vm1754_vm11, %v1982_v34, 0.0 }
 0x298   : > { %v2095_v39 = vadd.f32 %v2094_v29, %v2093_v28  ;;  %v2085_v41 = vsel %vm299_vm1, %v1983_v35, 0.0  ;;  %v2030_v30 = vrot.slane %v2016_v36, %v3082_v7  ;;  %v2031_v43 = vcombine.high %v2023_v37, %v2023_v37 }
 0x299   : > { %v2086_v13 = vadd.f32 %v2085_v41, %v2084_v40  ;;  %v2014_v45 = vrot.slane %v2000_v38, %v3082_v7  ;;  %v2015_v46 = vcombine.high %v2007_v31, %v2007_v31  ;;  %v2105_v48 = vsel %vm299_vm1, %v2023_v37, 0.0 }
 0x29a   : > { %2096 = vadd.xlane.f32.xlu1 %v2095_v39  ;;  %v2106_v50 = vsel %vm299_vm1, %v2031_v43, 0.0  ;;  %v2098_v51 = vsel %vm299_vm1, %v2007_v31, 0.0  ;;  %v2108_v33 = vsel %vm1754_vm11, %v2030_v30, 0.0 }
 0x29b   : > { %v2088_v47 = vadd.f32 %v2087_v44, %v2086_v13  ;;  %v2107_v3 = vadd.f32 %v2106_v50, %v2105_v48  ;;  %v2099_v53 = vsel %vm299_vm1, %v2015_v46, 0.0  ;;  %v2101_v57 = vsel %vm1754_vm11, %v2014_v45, 0.0 }
 0x29c   : > { %v2100_v55 = vadd.f32 %v2099_v53, %v2098_v51  ;;  %v2982_v50 = vmov 842150450  }
 0x29d   : > { %2089 = vadd.xlane.f32.xlu0 %v2088_v47  ;;  %v2109_v56 = vadd.f32 %v2108_v33, %v2107_v3  ;;  %v2216_v3 = vunpack.c.l.s4 %v2982_v50 }
 0x29e   : > { %v2102_v58 = vadd.f32 %v2101_v57, %v2100_v55 }
 0x29f   : > { %2110 = vadd.xlane.f32.xlu1 %v2109_v56 }
 0x2a1   : > { %2103 = vadd.xlane.f32.xlu0 %v2102_v58 }
 0x2b0   : > { %2206 = vperm.xlu1 %2840, %v254_v59  }
 0x2b4   : > { %2282 = vperm.xlu1 %2840, %v255_v19  }
 0x2b7   : > { %2202 = vperm.xlu0 %2839, %v253_v60  }
 0x2bb   : > { %2286 = vperm.xlu0 %2839, %v256_v61  }
 0x31b   : > { %v2069_v32 = vpop.xlane.xlu1 %2068 }
 0x31c   : > { %v2119_v62 = vsel %vm299_vm1, %v2069_v32, 0.0 }
 0x31d   : > { %v2120_v18 = vrot.slane %v2119_v62, 4 }
 0x31e   : > { %v2062_v0 = vpop.xlane.xlu0 %2061 }
 0x31f   : > { %v2121_v1 = vadd.f32 %v2120_v18, %v2119_v62  ;;  %v2112_v5 = vsel %vm299_vm1, %v2062_v0, 0.0 }
 0x320   : > { %v2113_v8 = vrot.slane %v2112_v5, 4 }
 0x321   : > { %v2122_v9 = vrot.slane %v2121_v1, 2 }
 0x322   : > { %v2114_v10 = vadd.f32 %v2113_v8, %v2112_v5 }
 0x323   : > { %v2123_v11 = vadd.f32 %v2122_v9, %v2121_v1  ;;  %v2083_v12 = vpop.xlane.xlu1 %2082  ;;  %v2983_v1 = vmov 269488144  }
 0x324   : > { %v2115_v6 = vrot.slane %v2114_v10, 2  ;;  %v2133_v14 = vsel %vm299_vm1, %v2083_v12, 0.0  ;;  %v2076_v20 = vpop.xlane.xlu0 %2075  ;;  %v2209_v5 = vunpack.c.l.s4 %v2983_v1 }
 0x325   : > { %v2124_v15 = vrot.slane %v2123_v11, 1  ;;  %v2134_v16 = vrot.slane %v2133_v14, 4  ;;  %v2126_v17 = vsel %vm299_vm1, %v2076_v20, 0.0  ;;  %v2217_v20 = vunpack.c.0.s8 %v2216_v3 }
 0x326   : > { %v2116_v22 = vadd.f32 %v2115_v6, %v2114_v10  ;;  %v2127_v21 = vrot.slane %v2126_v17, 4 }
 0x327   : > { %v2125_v23 = vadd.f32 %v2124_v15, %v2123_v11  ;;  %v2135_v25 = vadd.f32 %v2134_v16, %v2133_v14  ;;  %v2097_v26 = vpop.xlane.xlu1 %2096 }
 0x328   : > { %v2117_v28 = vrot.slane %v2116_v22, 1  ;;  %v2128_v29 = vadd.f32 %v2127_v21, %v2126_v17  ;;  %v2147_v34 = vsel %vm299_vm1, %v2097_v26, 0.0  ;;  %v2210_v26 = vunpack.c.0.s8 %v2209_v5 }
 0x329   : > { %v2169_v35 = vmul.f32 0.001953125, %v2125_v23  ;;  %v2136_v36 = vrot.slane %v2135_v25, 2  ;;  %v2148_v37 = vrot.slane %v2147_v34, 4 }
 0x32a   : > { %v2118_v38 = vadd.f32 %v2117_v28, %v2116_v22  ;;  %v2129_v31 = vrot.slane %v2128_v29, 2  ;;  %v2090_v39 = vpop.xlane.xlu0 %2089  ;;  %v2984_v22 = vmov 1414812756  }
 0x32b   : > { %v2177_v40 = vadd.f32 1e-05, %v2169_v35  ;;  %v2137_v41 = vadd.f32 %v2136_v36, %v2135_v25  ;;  %v2149_v13 = vadd.f32 %v2148_v37, %v2147_v34  ;;  %v2140_v30 = vsel %vm299_vm1, %v2090_v39, 0.0 }
 0x32c   : > { %v2168_v43 = vmul.f32 0.001953125, %v2118_v38  ;;  %v2130_v44 = vadd.f32 %v2129_v31, %v2128_v29  ;;  %v2141_v45 = vrot.slane %v2140_v30, 4  ;;  %v2111_v48 = vpop.xlane.xlu1 %2110  ;;  %v2223_v21 = vunpack.c.l.s4 %v2984_v22 }
 0x32d   : > { %2858 = vrsqrt.f32 %v2177_v40  ;;  %v2138_v46 = vrot.slane %v2137_v41, 1  ;;  %v2150_v47 = vrot.slane %v2149_v13, 2  ;;  %v2161_v55 = vsel %vm299_vm1, %v2111_v48, 0.0 }
 0x32e   : > { %v2176_v51 = vadd.f32 1e-05, %v2168_v43  ;;  %v2131_v53 = vrot.slane %v2130_v44, 1  ;;  %v2142_v33 = vadd.f32 %v2141_v45, %v2140_v30  ;;  %v2104_v56 = vpop.xlane.xlu0 %2103  ;;  %v2162_v59 = vrot.slane %v2161_v55, 4 }
 0x32f   : > { %v2139_v57 = vadd.f32 %v2138_v46, %v2137_v41  ;;  %v2151_v58 = vadd.f32 %v2150_v47, %v2149_v13  ;;  %v2154_v19 = vsel %vm299_vm1, %v2104_v56, 0.0  ;;  %v2985_v34 = vmov 1987475062  }
 0x330   : > { %2860 = vrsqrt.f32 %v2176_v51  ;;  %v2132_v60 = vadd.f32 %v2131_v53, %v2130_v44  ;;  %v2143_v61 = vrot.slane %v2142_v33, 2  ;;  %v2155_v32 = vrot.slane %v2154_v19, 4  ;;  %v3454_v8 = vpop.permute.xlu1 %2206 }
 0x331   : > { %v2171_v62 = vmul.f32 0.001953125, %v2139_v57  ;;  %v2152_v18 = vrot.slane %v2151_v58, 1  ;;  %v2163_v0 = vadd.f32 %v2162_v59, %v2161_v55  ;;  %v2230_v35 = vunpack.c.l.s4 %v2985_v34 }
 0x332   : > { %v2170_v9 = vmul.f32 0.001953125, %v2132_v60  ;;  %v2144_v10 = vadd.f32 %v2143_v61, %v2142_v33  ;;  %v2156_v11 = vadd.f32 %v2155_v32, %v2154_v19  ;;  %v2220_v39 = vsub.s32 %v2217_v20, %v3075_v4 }
 0x333   : > { %v2179_v12 = vadd.f32 1e-05, %v2171_v62  ;;  %v2153_v6 = vadd.f32 %v2152_v18, %v2151_v58  ;;  %v2164_v14 = vrot.slane %v2163_v0, 2  ;;  %v2224_v30 = vunpack.c.0.s8 %v2223_v21 }
 0x334   : > { %v2178_v15 = vadd.f32 1e-05, %v2170_v9  ;;  %v2145_v16 = vrot.slane %v2144_v10, 1  ;;  %v2157_v17 = vrot.slane %v2156_v11, 2  ;;  %v2283_v40 = vpop.permute.xlu1 %2282  ;;  %v3459_v45 = vsub.s32 %v2210_v26, %v3075_v4 }
 0x335   : > { %2862 = vrsqrt.f32 %v2179_v12  ;;  %v2173_v23 = vmul.f32 0.001953125, %v2153_v6  ;;  %v2165_v25 = vadd.f32 %v2164_v14, %v2163_v0  ;;  %v2231_v3 = vunpack.c.0.s8 %v2230_v35 }
 0x336   : > { %2864 = vrsqrt.f32 %v2178_v15  ;;  %v2146_v28 = vadd.f32 %v2145_v16, %v2144_v10  ;;  %v2158_v29 = vadd.f32 %v2157_v17, %v2156_v11  ;;  %v2203_v36 = vpop.permute.xlu0 %2202  ;;  %v2301_v51 = vrot.slane %v2283_v40, %v2220_v39 }
 0x337   : > { %v2859_v37 = vpop.eup %2858  ;;  %v2181_v38 = vadd.f32 1e-05, %v2173_v23  ;;  %v2166_v31 = vrot.slane %v2165_v25, 1  ;;  %v2221_v46 = vrot.slane %v2203_v36, %v2220_v39  ;;  %v2214_v55 = vrot.slane %v2203_v36, %v3459_v45 }
 0x338   : > { %v2172_v41 = vmul.f32 0.001953125, %v2146_v28  ;;  %v2159_v13 = vrot.slane %v2158_v29, 1  ;;  %v2193_v43 = vmul.f32 %v2859_v37, %v3346_v49  ;;  %v2294_v58 = vrot.slane %v2283_v40, %v3459_v45 }
 0x339   : > { %2866 = vrsqrt.f32 %v2181_v38  ;;  %v2167_v44 = vadd.f32 %v2166_v31, %v2165_v25  ;;  %v2234_v61 = vsub.s32 %v2231_v3, %v3075_v4  ;;  %v2227_v62 = vsub.s32 %v2224_v30, %v3075_v4 }
 0x33a   : > { %v2861_v47 = vpop.eup %2860  ;;  %v2180_v48 = vadd.f32 1e-05, %v2172_v41  ;;  %v2160_v50 = vadd.f32 %v2159_v13, %v2158_v29  ;;  %v2273_v56 = vmul.f32 %v2221_v46, %v2193_v43  ;;  %v2287_v17 = vpop.permute.xlu0 %2286  ;;  %v2249_v22 = vrot.slane %v3454_v8, %v2220_v39 }
 0x33b   : > { %v2175_v53 = vmul.f32 0.001953125, %v2167_v44  ;;  %v2192_v33 = vmul.f32 %v2861_v47, %v3350_v52  ;;  %v2235_v5 = vrot.slane %v2203_v36, %v2234_v61  ;;  %v2228_v10 = vrot.slane %v2203_v36, %v2227_v62 }
 0x33c   : > { %2868 = vrsqrt.f32 %v2180_v48  ;;  %v2174_v57 = vmul.f32 0.001953125, %v2160_v50  ;;  %v3464_v19 = vadd.f32 %v2301_v51, %v2273_v56  ;;  %v2315_v6 = vrot.slane %v2283_v40, %v2234_v61 }
 0x33d   : > { %v2183_v49 = vadd.f32 1e-05, %v2175_v53  ;;  %v2272_v59 = vmul.f32 %v2214_v55, %v2192_v33  ;;  %v2308_v15 = vrot.slane %v2283_v40, %v2227_v62  ;;  %v2329_v28 = vrot.slane %v2287_v17, %v2220_v39 }
 0x33e   : > { %v2182_v60 = vadd.f32 1e-05, %v2174_v57  ;;  %v2361_v52 = vmin.f32 %v3464_v19, 20.0  ;;  %v2242_v29 = vrot.slane %v3454_v8, %v3459_v45  ;;  %v2322_v40 = vrot.slane %v2287_v17, %v3459_v45 }
 0x33f   : > { %v2863_v32 = vpop.eup %2862  ;;  %2870 = vrsqrt.f32 %v2183_v49  ;;  %v3468_v18 = vadd.f32 %v2294_v58, %v2272_v59  ;;  %v2263_v13 = vrot.slane %v3454_v8, %v2234_v61  ;;  %v2256_v43 = vrot.slane %v3454_v8, %v2227_v62 }
 0x340   : > { %v2865_v0 = vpop.eup %2864  ;;  %2872 = vrsqrt.f32 %v2182_v60  ;;  %v2195_v1 = vmul.f32 %v2863_v32, %v3361_v2  ;;  %v2370_v12 = vmul.f32 1.442695, %v2361_v52  ;;  %v2343_v47 = vrot.slane %v2287_v17, %v2234_v61 }
 0x341   : > { %v2194_v9 = vmul.f32 %v2865_v0, %v3357_v63  ;;  %v2360_v11 = vmin.f32 %v3468_v18, 20.0  ;;  %v2336_v3 = vrot.slane %v2287_v17, %v2227_v62  ;;  %vm2432_vm12 = vcmp.gt.f32.partialorder %v3468_v18, 20.0 }
 0x342   : > { %v2275_v14 = vmul.f32 %v2235_v5, %v2195_v1  ;;  %2874 = vpow2.f32 %v2370_v12  ;;  %vm2433_vm13 = vcmp.gt.f32.partialorder %v3464_v19, 20.0 }
 0x343   : > { %v2867_v20 = vpop.eup %2866  ;;  %v2274_v4 = vmul.f32 %v2228_v10, %v2194_v9  ;;  %v2368_v16 = vmul.f32 1.442695, %v2360_v11 }
 0x344   : > { %v3475_v21 = vadd.f32 %v2315_v6, %v2275_v14  ;;  %v2197_v2 = vmul.f32 %v2867_v20, %v3371_v24 }
 0x345   : > { %v3478_v23 = vadd.f32 %v2308_v15, %v2274_v4  ;;  %2876 = vpow2.f32 %v2368_v16 }
 0x346   : > { %v2869_v63 = vpop.eup %2868  ;;  %v2363_v25 = vmin.f32 %v3475_v21, 20.0  ;;  %v2277_v26 = vmul.f32 %v2249_v22, %v2197_v2  ;;  %vm2435_vm14 = vcmp.gt.f32.partialorder %v3475_v21, 20.0 }
 0x347   : > { %v2362_v34 = vmin.f32 %v3478_v23, 20.0  ;;  %v2196_v35 = vmul.f32 %v2869_v63, %v3374_v27  ;;  %vm2434_vm15 = vcmp.gt.f32.partialorder %v3478_v23, 20.0 }
 0x348   : > { %v2374_v36 = vmul.f32 1.442695, %v2363_v25  ;;  %v3485_v37 = vadd.f32 %v2329_v28, %v2277_v26 }
 0x349   : > { %v2871_v38 = vpop.eup %2870  ;;  %v2372_v24 = vmul.f32 1.442695, %v2362_v34  ;;  %v2276_v31 = vmul.f32 %v2242_v29, %v2196_v35 }
 0x34a   : > { %v2873_v41 = vpop.eup %2872  ;;  %2878 = vpow2.f32 %v2374_v36  ;;  %v2199_v39 = vmul.f32 %v2871_v38, %v3386_v42  ;;  %v2365_v30 = vmin.f32 %v3485_v37, 20.0  ;;  %vm2437_vm2 = vcmp.gt.f32.partialorder %v3485_v37, 20.0 }
 0x34b   : > { %2880 = vpow2.f32 %v2372_v24  ;;  %v2198_v27 = vmul.f32 %v2873_v41, %v3395_v54  ;;  %v3493_v44 = vadd.f32 %v2322_v40, %v2276_v31 }
 0x34c   : > { %v2279_v46 = vmul.f32 %v2263_v13, %v2199_v39  ;;  %v2378_v48 = vmul.f32 1.442695, %v2365_v30  ;;  %v2875_v50 = vpop.eup %2874 }
 0x34d   : > { %v2278_v45 = vmul.f32 %v2256_v43, %v2198_v27  ;;  %v2364_v51 = vmin.f32 %v3493_v44, 20.0  ;;  %v2385_v53 = vadd.f32 2.0, %v2875_v50  ;;  %vm2436_vm1 = vcmp.gt.f32.partialorder %v3493_v44, 20.0 }
 0x34e   : > { %v3496_v33 = vadd.f32 %v2343_v47, %v2279_v46  ;;  %2882 = vpow2.f32 %v2378_v48 }
 0x34f   : > { %v2877_v42 = vpop.eup %2876  ;;  %v3498_v55 = vadd.f32 %v2336_v3, %v2278_v45  ;;  %v2376_v8 = vmul.f32 1.442695, %v2364_v51  ;;  %v2393_v54 = vmul.f32 %v2875_v50, %v2385_v53 }
 0x350   : > { %v2384_v56 = vadd.f32 2.0, %v2877_v42  ;;  %v2367_v57 = vmin.f32 %v3496_v33, 20.0  ;;  %vm2439_vm4 = vcmp.gt.f32.partialorder %v3496_v33, 20.0 }
 0x351   : > { %v2366_v49 = vmin.f32 %v3498_v55, 20.0  ;;  %2884 = vpow2.f32 %v2376_v8  ;;  %v2401_v59 = vadd.f32 2.0, %v2393_v54  ;;  %vm2438_vm3 = vcmp.gt.f32.partialorder %v3498_v55, 20.0 }
 0x352   : > { %v2392_v58 = vmul.f32 %v2877_v42, %v2384_v56  ;;  %v2382_v61 = vmul.f32 1.442695, %v2367_v57 }
 0x353   : > { %v2380_v60 = vmul.f32 1.442695, %v2366_v49  ;;  %2886 = vrcp.f32 %v2401_v59 }
 0x354   : > { %v2879_v32 = vpop.eup %2878  ;;  %v2400_v62 = vadd.f32 2.0, %v2392_v58 }
 0x355   : > { %v2881_v52 = vpop.eup %2880  ;;  %v2387_v0 = vadd.f32 2.0, %v2879_v32  ;;  %2888 = vpow2.f32 %v2380_v60 }
 0x356   : > { %v2386_v1 = vadd.f32 2.0, %v2881_v52  ;;  %2890 = vrcp.f32 %v2400_v62 }
 0x357   : > { %v2395_v5 = vmul.f32 %v2879_v32, %v2387_v0  ;;  %2892 = vpow2.f32 %v2382_v61 }
 0x358   : > { %v2883_v9 = vpop.eup %2882  ;;  %v2394_v10 = vmul.f32 %v2881_v52, %v2386_v1 }
 0x359   : > { %v2403_v11 = vadd.f32 2.0, %v2395_v5  ;;  %v2389_v12 = vadd.f32 2.0, %v2883_v9 }
 0x35a   : > { %v2402_v6 = vadd.f32 2.0, %v2394_v10 }
 0x35b   : > { %v2885_v14 = vpop.eup %2884  ;;  %2894 = vrcp.f32 %v2403_v11  ;;  %v2397_v20 = vmul.f32 %v2883_v9, %v2389_v12 }
 0x35c   : > { %2896 = vrcp.f32 %v2402_v6  ;;  %v2388_v15 = vadd.f32 2.0, %v2885_v14 }
 0x35d   : > { %v2405_v4 = vadd.f32 2.0, %v2397_v20  ;;  %v2887_v16 = vpop.eup %2886 }
 0x35e   : > { %v2396_v17 = vmul.f32 %v2885_v14, %v2388_v15  ;;  %v2417_v2 = vmul.f32 %v2887_v16, %v2393_v54 }
 0x35f   : > { %v2889_v22 = vpop.eup %2888  ;;  %2898 = vrcp.f32 %v2405_v4 }
 0x360   : > { %v2891_v63 = vpop.eup %2890  ;;  %v2390_v25 = vadd.f32 2.0, %v2889_v22  ;;  %v2404_v26 = vadd.f32 2.0, %v2396_v17  ;;  %v2425_v38 = vmul.f32 %v2417_v2, %v3464_v19 }
 0x361   : > { %v2893_v28 = vpop.eup %2892  ;;  %v2416_v29 = vmul.f32 %v2891_v63, %v2392_v58 }
 0x362   : > { %v2391_v34 = vadd.f32 2.0, %v2893_v28  ;;  %v2398_v35 = vmul.f32 %v2889_v22, %v2390_v25  ;;  %2900 = vrcp.f32 %v2404_v26  ;;  %v2441_v27 = vsel %vm2433_vm13, %v3464_v19, %v2425_v38 }
 0x363   : > { %v2424_v36 = vmul.f32 %v2416_v29, %v3468_v18 }
 0x364   : > { %v2399_v24 = vmul.f32 %v2893_v28, %v2391_v34  ;;  %v2406_v31 = vadd.f32 2.0, %v2398_v35 }
 0x365   : > { %v2895_v40 = vpop.eup %2894  ;;  %v2440_v43 = vsel %vm2432_vm12, %v3468_v18, %v2424_v36 }
 0x366   : > { %v2897_v41 = vpop.eup %2896  ;;  %v2419_v13 = vmul.f32 %v2895_v40, %v2395_v5  ;;  %v2407_v39 = vadd.f32 2.0, %v2399_v24  ;;  %2902 = vrcp.f32 %v2406_v31  ;;  %v2456_v45 = vcombine.low %v2440_v43, %v2441_v27 }
 0x367   : > { %v2418_v30 = vmul.f32 %v2897_v41, %v2394_v10  ;;  %v2457_v3 = vcombine.high %v2440_v43, %v2441_v27 }
 0x368   : > { %v2427_v46 = vmul.f32 %v2419_v13, %v3475_v21  ;;  %2904 = vrcp.f32 %v2407_v39  ;;  %v2466_v56 = vrot.slane %v2456_v45, %v3082_v7 }
 0x369   : > { %v2899_v47 = vpop.eup %2898  ;;  %v2426_v48 = vmul.f32 %v2418_v30, %v3478_v23  ;;  %v2473_v54 = vrot.slane %v2457_v3, %v3082_v7 }
 0x36a   : > { %v2443_v50 = vsel %vm2435_vm14, %v3475_v21, %v2427_v46  ;;  %v2421_v18 = vmul.f32 %v2899_v47, %v2397_v20 }
 0x36b   : > { %v2442_v19 = vsel %vm2434_vm15, %v3478_v23, %v2426_v48 }
 0x36c   : > { %v2901_v51 = vpop.eup %2900  ;;  %v2458_v53 = vcombine.low %v2442_v19, %v2443_v50  ;;  %v2459_v42 = vcombine.high %v2442_v19, %v2443_v50  ;;  %v2429_v58 = vmul.f32 %v2421_v18, %v3485_v37 }
 0x36d   : > { %v2420_v8 = vmul.f32 %v2901_v51, %v2396_v17 }
 0x36e   : > { %v2480_v57 = vrot.slane %v2458_v53, %v3082_v7  ;;  %v2487_v49 = vrot.slane %v2459_v42, %v3082_v7  ;;  %v2445_v1 = vsel %vm2437_vm2, %v3485_v37, %v2429_v58 }
 0x36f   : > { %v2428_v21 = vmul.f32 %v2420_v8, %v3493_v44 }
 0x370   : > { %v2488_v59 = vcombine.low %v2466_v56, %v2480_v57  ;;  %v2489_v23 = vcombine.high %v2466_v56, %v2480_v57  ;;  %v2490_v60 = vcombine.low %v2473_v54, %v2487_v49  ;;  %v2903_v61 = vpop.eup %2902 }
 0x371   : > { %v2422_v62 = vmul.f32 %v2903_v61, %v2398_v35  ;;  %v2444_v0 = vsel %vm2436_vm1, %v3493_v44, %v2428_v21 }
 0x372   : > { %v2905_v32 = vpop.eup %2904  ;;  %2532 = vst [vmem:[%s3523_s11] sm:$0xff] %v2488_v59  ;;  %2533 = vst [vmem:[%s3523_s11 + $0x8] sm:$0xff] %v2489_v23  ;;  %v2491_v11 = vcombine.low %v2444_v0, %v2445_v1  ;;  %v2492_v12 = vcombine.high %v2444_v0, %v2445_v1 }
 0x373   : > { %2535 = vst.msk [vmem:[%s3523_s11 + $0x10] sm:$0xff] %vm2534_vm0, %v2490_v60  ;;  %v2423_v52 = vmul.f32 %v2905_v32, %v2399_v24  ;;  %v2430_v5 = vmul.f32 %v2422_v62, %v3498_v55 }
 0x374   : > { %v2501_v14 = vrot.slane %v2491_v11, %v3082_v7  ;;  %v2508_v20 = vrot.slane %v2492_v12, %v3082_v7 }
 0x375   : > { %v2431_v9 = vmul.f32 %v2423_v52, %v3496_v33  ;;  %v2446_v10 = vsel %vm2438_vm3, %v3498_v55, %v2430_v5 }
 0x377   : > { %v2447_v6 = vsel %vm2439_vm4, %v3496_v33, %v2431_v9 }
 0x378   : > { %v2493_v37 = vcombine.low %v2446_v10, %v2447_v6  ;;  %v2494_v44 = vcombine.high %v2446_v10, %v2447_v6 }
 0x37a   : > { %v2515_v15 = vrot.slane %v2493_v37, %v3082_v7  ;;  %v2522_v55 = vrot.slane %v2494_v44, %v3082_v7 }
 0x37c   : > { %v2523_v33 = vcombine.low %v2501_v14, %v2515_v15  ;;  %v2524_v4 = vcombine.high %v2501_v14, %v2515_v15  ;;  %v2525_v16 = vcombine.low %v2508_v20, %v2522_v55 }
 0x37e   : > { %2536 = vst [vmem:[%s3523_s11 + $0x18] sm:$0xff] %v2523_v33  ;;  %2537 = vst [vmem:[%s3523_s11 + $0x20] sm:$0xff] %v2524_v4 }
 0x37f   : > { %2538 = vst.msk [vmem:[%s3523_s11 + $0x28] sm:$0xff] %vm2534_vm0, %v2525_v16 }
 0x380   : > { %2919 = shalt.err (!%p2916_p3)
}
 0x381   : > { %s2920_s26 = scalar_lea.hbm %s3548_s16, 768  ;;  %s2924_s9 = scalar_lea.hbm %s3605_s6, 1536 }
 0x382   : > { %p2921_p4 = scmp.ne.s32.totalorder %s3548_s16, %s2920_s26  ;;  %p2925_p9 = scmp.lt.u32.totalorder %s3548_s16, %s3605_s6 }
 0x383   : > { %p2926_p10 = scmp.lt.u32.totalorder %s2924_s9, %s2920_s26  ;;  %p2928_p12 = scmp.lt.u32.totalorder %s2920_s26, %s3548_s16 }
 0x384   : > { %p2922_p7 = pnand %p2921_p4, %p3062_p5 }
 0x385   : > { %p2927_p11 = por %p2926_p10, %p2925_p9 }
 0x386   : > { %p2923_p8 = pneg %p2922_p7 }
 0x387   : > { %p2929_p13 = por %p2928_p12, %p2927_p11 }
 0x389   : > { %p2930_p0 = pnand %p2929_p13, %p2923_p8 }
 0x38b   : > { %2933 = shalt.err (!%p2930_p0)
}
 0x38c   : > { %s2987_s12 = smov 384   ;;  %s2988_s14 = smov 24  }
 0x38d   : > { %2782 = dma.vmem_to_hbm [thread:$0]  (%p3062_p5), %s3550_s13, 768, %s3548_s16, %s3558_s25, %s2987_s12, %s2987_s12, %s2988_s14  }
 0x38e PF: > { %p2788_p1 = scmp.ge.s32.totalorder %s2968_s24, 2  ;;  %s2568_s15 = sand.u32 1, %s2956_s21  }
 0x38f   : > { %s2569_s17 = scalar_lea.sflag [#allocation3], %s2568_s15 }
 0x390   : > { %p2785_p2 = pnand %p2788_p1, %p3066_p6 }
 0x392   : > { %2951 = dma.done.wait (!%p2785_p2), %s2569_s17, 768  }
 0x393   : > { %2953 = vsyncadd (!%p2785_p2), %s2569_s17, 4294966528  ;;  %p16_p3 = scmp.ge.s32.totalorder %s3049_s27, 4   ;;  %s3608_s21 = smov %s2960_s22 }
 0x394   : > { %s3609_s22 = smov %s2964_s23  ;;  %s3610_s23 = smov %s3060_s30 }
 0x395   : > { %s3611_s24 = smov %s3049_s27  ;;  %18 = sbr.rel (!%p16_p3) target bundleno = 3 (0x3), region = 87 }
 0x39c   :  { %2574 = vsyncpa [#allocation3], 1 }
 0x39d   :  { %2576 = vsyncpa [#allocation3 + $0x1], 1 }

</bundles_post_ra>
